<compile_context>
chip_gen: v6e
topology: v6e:2x2x1
jax: 0.10.0
libtpu: 0.0.40
codegen_flags: <defaults>
</compile_context>

<pallas_src>
import functools
import math

import jax
import jax.numpy as jnp
from jax import lax
from jax.experimental import pallas as pl
from jax.experimental.pallas import tpu as pltpu


# ---------------------------------------------------------------------------
# In-kernel helpers (operate on traced jnp values inside the fused layer kernel)
# ---------------------------------------------------------------------------

def _mha(q, k, v, bias, nhead):
    """Head-batched scaled-dot attention (scale already folded into the Q weights).

    q: [Sq, D] f32, k/v: [Sk, D] f32, bias: [Sq, Sk] f32 or None.
    One reshape+transpose to head-major [H, S, dh] (done in f32), then a single
    leading-batch einsum per matmul -- no per-head Python loop, no lane concat.
    Returns [Sq, D] f32.
    """
    sq, d = q.shape
    sk = k.shape[0]
    dh = d // nhead
    # head-major views; relayouts kept in f32 (best-supported layout)
    qh = jnp.transpose(q.reshape(sq, nhead, dh), (1, 0, 2)).astype(jnp.bfloat16)
    kh = jnp.transpose(k.reshape(sk, nhead, dh), (1, 0, 2)).astype(jnp.bfloat16)
    vh = jnp.transpose(v.reshape(sk, nhead, dh), (1, 0, 2)).astype(jnp.bfloat16)

    s = jnp.einsum("hqd,hkd->hqk", qh, kh,
                   preferred_element_type=jnp.float32)          # [H, Sq, Sk]
    if bias is not None:
        s = s + bias[None, :, :]                                 # broadcast over heads
    m = jnp.max(s, axis=-1, keepdims=True)
    p = jnp.exp(s - m)
    inv = pl.reciprocal(jnp.sum(p, axis=-1, keepdims=True), approx=True)  # EUP slot
    p = (p * inv).astype(jnp.bfloat16)
    ctx = jnp.einsum("hqk,hkd->hqd", p, vh,
                     preferred_element_type=jnp.float32)         # [H, Sq, dh]
    return jnp.transpose(ctx, (1, 0, 2)).reshape(sq, d)          # [Sq, D]


def _layer_norm(h, g, b, eps):
    # var = E[x^2] - mu^2 : the two cross-lane reductions are independent and can
    # overlap on the XLU units, instead of serializing through (x - mu)^2.
    mu = jnp.mean(h, axis=-1, keepdims=True)
    ms = jnp.mean(h * h, axis=-1, keepdims=True)
    var = ms - mu * mu
    return (h - mu) * lax.rsqrt(var + eps) * g + b


# ---------------------------------------------------------------------------
# Fused decoder-layer kernel: one pallas_call per layer, grid = (batch, q-tile)
# ---------------------------------------------------------------------------

def _decoder_layer_kernel(xq_ref, xf_ref, mem_ref, bias_ref,
                          sa_wq, sa_bq, sa_wk, sa_bk, sa_wv, sa_bv, sa_wo, sa_bo,
                          ln1_g, ln1_b,
                          ca_wq, ca_bq, ca_wk, ca_bk, ca_wv, ca_bv, ca_wo, ca_bo,
                          ln2_g, ln2_b,
                          ff_w1, ff_b1, ff_w2, ff_b2, ln3_g, ln3_b,
                          *rest, nhead, eps, has_final_ln):
    if has_final_ln:
        fin_g, fin_b, o_ref = rest
    else:
        (o_ref,) = rest

    xq = xq_ref[0]      # [TQ, D] f32  -- query tile
    xf = xf_ref[0]      # [S,  D] f32  -- full target sequence (self-attn K/V source)
    mem = mem_ref[0]    # [Sm, D] f32
    bias = bias_ref[0]  # [TQ, S] f32  -- A_tgt rows for this query tile

    # cast activations to bf16 once per source and reuse (minimize VALU casts)
    xq_b = xq.astype(jnp.bfloat16)
    xf_b = xf.astype(jnp.bfloat16)
    mem_b = mem.astype(jnp.bfloat16)

    def proj(a_b, w, b):
        return jnp.dot(a_b, w[...], preferred_element_type=jnp.float32) + b[...]

    # ---- self-attention (softmax scale pre-folded into sa_wq / sa_bq) ----
    q = proj(xq_b, sa_wq, sa_bq)          # [TQ, D]
    k = proj(xf_b, sa_wk, sa_bk)          # [S,  D]
    v = proj(xf_b, sa_wv, sa_bv)          # [S,  D]
    ctx = _mha(q, k, v, bias, nhead)
    sa = proj(ctx.astype(jnp.bfloat16), sa_wo, sa_bo)
    x = _layer_norm(xq + sa, ln1_g[...], ln1_b[...], eps)

    # ---- cross-attention with memory (no bias; scale folded into ca_wq / ca_bq) ----
    x_b = x.astype(jnp.bfloat16)
    q = proj(x_b, ca_wq, ca_bq)           # [TQ, D]
    k = proj(mem_b, ca_wk, ca_bk)         # [Sm, D]
    v = proj(mem_b, ca_wv, ca_bv)         # [Sm, D]
    ctx = _mha(q, k, v, None, nhead)
    ca = proj(ctx.astype(jnp.bfloat16), ca_wo, ca_bo)
    x = _layer_norm(x + ca, ln2_g[...], ln2_b[...], eps)

    # ---- feed-forward ----
    h = jnp.maximum(proj(x.astype(jnp.bfloat16), ff_w1, ff_b1), 0.0)   # [TQ, FF]
    f = proj(h.astype(jnp.bfloat16), ff_w2, ff_b2)                     # [TQ, D]
    x = _layer_norm(x + f, ln3_g[...], ln3_b[...], eps)

    # ---- optional final LayerNorm fused into the last layer ----
    if has_final_ln:
        x = _layer_norm(x, fin_g[...], fin_b[...], eps)

    o_ref[0] = x.astype(o_ref.dtype)


def decoder_layer(x, memory, a_tgt, p, *, nhead, eps=1e-5, final_norm=None):
    """x: [B, S, D], memory: [B, Sm, D], a_tgt: [B, S, S] -> [B, S, D]."""
    B, S, D = x.shape
    Sm = memory.shape[1]
    FF = p["ff_w1"].shape[1]

    # Query-tile size: full sequence at toy sizes, 128 rows at production sizes
    # (second parallel grid axis -> more iterations for v7x's 2 TensorCores).
    TQ = S if (S <= 128 or S % 128 != 0) else 128
    NQ = S // TQ

    def wspec(shape):
        # Constant blocks (weights / biases / LN params): single-buffered.
        return pl.BlockSpec(shape, lambda b, q: (0, 0), pipeline_mode=pl.Buffered(1))

    in_specs = [
        pl.BlockSpec((1, TQ, D), lambda b, q: (b, q, 0)),   # x query tile
        pl.BlockSpec((1, S, D), lambda b, q: (b, 0, 0)),    # x full (self-attn K/V)
        pl.BlockSpec((1, Sm, D), lambda b, q: (b, 0, 0)),   # memory
        pl.BlockSpec((1, TQ, S), lambda b, q: (b, q, 0)),   # A_tgt rows (bias)
        wspec((D, D)), wspec((1, D)),      # sa q-proj (scale folded in)
        wspec((D, D)), wspec((1, D)),      # sa k-proj
        wspec((D, D)), wspec((1, D)),      # sa v-proj
        wspec((D, D)), wspec((1, D)),      # sa out-proj
        wspec((1, D)), wspec((1, D)),      # ln1
        wspec((D, D)), wspec((1, D)),      # ca q-proj (scale folded in)
        wspec((D, D)), wspec((1, D)),      # ca k-proj
        wspec((D, D)), wspec((1, D)),      # ca v-proj
        wspec((D, D)), wspec((1, D)),      # ca out-proj
        wspec((1, D)), wspec((1, D)),      # ln2
        wspec((D, FF)), wspec((1, FF)),    # ff1
        wspec((FF, D)), wspec((1, D)),     # ff2
        wspec((1, D)), wspec((1, D)),      # ln3
    ]
    args = [x, x, memory, a_tgt,
            p["sa_wq"], p["sa_bq"], p["sa_wk"], p["sa_bk"], p["sa_wv"], p["sa_bv"],
            p["sa_wo"], p["sa_bo"], p["ln1_g"], p["ln1_b"],
            p["ca_wq"], p["ca_bq"], p["ca_wk"], p["ca_bk"], p["ca_wv"], p["ca_bv"],
            p["ca_wo"], p["ca_bo"], p["ln2_g"], p["ln2_b"],
            p["ff_w1"], p["ff_b1"], p["ff_w2"], p["ff_b2"], p["ln3_g"], p["ln3_b"]]

    has_final_ln = final_norm is not None
    if has_final_ln:
        in_specs += [wspec((1, D)), wspec((1, D))]
        args += [jnp.asarray(final_norm["g"], jnp.float32).reshape(1, D),
                 jnp.asarray(final_norm["b"], jnp.float32).reshape(1, D)]

    kernel = functools.partial(_decoder_layer_kernel, nhead=nhead, eps=eps,
                               has_final_ln=has_final_ln)
    return pl.pallas_call(
        kernel,
        out_shape=jax.ShapeDtypeStruct((B, S, D), jnp.float32),
        grid=(B, NQ),
        in_specs=in_specs,
        out_specs=pl.BlockSpec((1, TQ, D), lambda b, q: (b, q, 0)),
        compiler_params=pltpu.CompilerParams(
            dimension_semantics=("parallel", "parallel"),
            # Raised well above the 16/32 MiB scoped defaults; 64 MiB is safe on
            # every generation (== v7x physical).  Tune higher on v5e/v6e at
            # production sizes.
            vmem_limit_bytes=64 * 1024 * 1024),
    )(*args)


# ---------------------------------------------------------------------------
# Standalone LayerNorm kernel (only used as a fallback when num_layers == 0;
# the final norm is otherwise fused into the last decoder layer's kernel).
# ---------------------------------------------------------------------------

def _ln_kernel(x_ref, g_ref, b_ref, o_ref, *, eps):
    o_ref[0] = _layer_norm(x_ref[0], g_ref[...], b_ref[...], eps)


def layer_norm(x, g, b, eps=1e-5):
    B, S, D = x.shape
    return pl.pallas_call(
        functools.partial(_ln_kernel, eps=eps),
        out_shape=jax.ShapeDtypeStruct((B, S, D), jnp.float32),
        grid=(B,),
        in_specs=[pl.BlockSpec((1, S, D), lambda b: (b, 0, 0)),
                  pl.BlockSpec((1, D), lambda b: (0, 0), pipeline_mode=pl.Buffered(1)),
                  pl.BlockSpec((1, D), lambda b: (0, 0), pipeline_mode=pl.Buffered(1))],
        out_specs=pl.BlockSpec((1, S, D), lambda b: (b, 0, 0)),
        compiler_params=pltpu.CompilerParams(
            dimension_semantics=("parallel",),
            vmem_limit_bytes=64 * 1024 * 1024),
    )(x, jnp.asarray(g, jnp.float32).reshape(1, D),
      jnp.asarray(b, jnp.float32).reshape(1, D))


# ---------------------------------------------------------------------------
# TransformerDecoder forward (mirrors the PyTorch module)
# ---------------------------------------------------------------------------

def transformer_decoder(tgt, memory, A_tgt, layer_params, nhead,
                        norm_params=None, tgt_mask=None, memory_mask=None,
                        tgt_key_padding_mask=None, memory_key_padding_mask=None):
    # TODO(synk): masks accepted for API parity but assumed None (as in the tested spec).
    output = tgt
    n = len(layer_params)
    for i, p in enumerate(layer_params):           # one fused pallas_call per layer
        fused_norm = norm_params if (norm_params is not None and i == n - 1) else None
        output = decoder_layer(output, memory, A_tgt, p, nhead=nhead,
                               final_norm=fused_norm)
    if norm_params is not None and n == 0:         # fallback: norm with no layers
        output = layer_norm(output, norm_params["g"], norm_params["b"])
    return output


# ---------------------------------------------------------------------------
# Deterministic parameter construction (PyTorch layout) + host-side prep
# ---------------------------------------------------------------------------

def init_layer_params(key, d_model, nhead, dim_ff):
    """PyTorch-convention float32 parameters ([out_features, in_features])."""
    ks = jax.random.split(key, 6)
    s = 0.05
    return {
        "sa_in_w": s * jax.random.normal(ks[0], (3 * d_model, d_model), jnp.float32),
        "sa_in_b": jnp.zeros((3 * d_model,), jnp.float32),
        "sa_out_w": s * jax.random.normal(ks[1], (d_model, d_model), jnp.float32),
        "sa_out_b": jnp.zeros((d_model,), jnp.float32),
        "ca_in_w": s * jax.random.normal(ks[2], (3 * d_model, d_model), jnp.float32),
        "ca_in_b": jnp.zeros((3 * d_model,), jnp.float32),
        "ca_out_w": s * jax.random.normal(ks[3], (d_model, d_model), jnp.float32),
        "ca_out_b": jnp.zeros((d_model,), jnp.float32),
        "ff1_w": s * jax.random.normal(ks[4], (dim_ff, d_model), jnp.float32),
        "ff1_b": jnp.zeros((dim_ff,), jnp.float32),
        "ff2_w": s * jax.random.normal(ks[5], (d_model, dim_ff), jnp.float32),
        "ff2_b": jnp.zeros((d_model,), jnp.float32),
        "ln1_g": jnp.ones((d_model,), jnp.float32),
        "ln1_b": jnp.zeros((d_model,), jnp.float32),
        "ln2_g": jnp.ones((d_model,), jnp.float32),
        "ln2_b": jnp.zeros((d_model,), jnp.float32),
        "ln3_g": jnp.ones((d_model,), jnp.float32),
        "ln3_b": jnp.zeros((d_model,), jnp.float32),
    }


def prepare_layer_params(p, nhead):
    """One-time host prep: pre-transpose weights to [Din, Dout] bf16 (MXU-ready),
    split packed in_proj into separate Q/K/V parts (no in-kernel lane slices), fold
    the 1/sqrt(dh) softmax scale into the Q weights/biases, reshape biases/LN to 2-D."""
    D = p["sa_out_w"].shape[0]
    scale = 1.0 / math.sqrt(D // nhead)

    def tw(w):   # weight: transpose + bf16
        return jnp.asarray(w.T, jnp.bfloat16)

    def rb(b):   # bias / LN param: keep f32, make 2-D for lane layout
        return jnp.asarray(b, jnp.float32).reshape(1, -1)

    sa_t = p["sa_in_w"].T          # [D, 3D]
    ca_t = p["ca_in_w"].T          # [D, 3D]
    sa_b = p["sa_in_b"]
    ca_b = p["ca_in_b"]
    return {
        # self-attention (Q weights/biases pre-scaled by 1/sqrt(dh))
        "sa_wq": jnp.asarray(sa_t[:, :D] * scale, jnp.bfloat16),
        "sa_bq": rb(sa_b[:D] * scale),
        "sa_wk": jnp.asarray(sa_t[:, D:2 * D], jnp.bfloat16),
        "sa_bk": rb(sa_b[D:2 * D]),
        "sa_wv": jnp.asarray(sa_t[:, 2 * D:], jnp.bfloat16),
        "sa_bv": rb(sa_b[2 * D:]),
        "sa_wo": tw(p["sa_out_w"]), "sa_bo": rb(p["sa_out_b"]),
        "ln1_g": rb(p["ln1_g"]), "ln1_b": rb(p["ln1_b"]),
        # cross-attention (Q weights/biases pre-scaled)
        "ca_wq": jnp.asarray(ca_t[:, :D] * scale, jnp.bfloat16),
        "ca_bq": rb(ca_b[:D] * scale),
        "ca_wk": jnp.asarray(ca_t[:, D:2 * D], jnp.bfloat16),
        "ca_bk": rb(ca_b[D:2 * D]),
        "ca_wv": jnp.asarray(ca_t[:, 2 * D:], jnp.bfloat16),
        "ca_bv": rb(ca_b[2 * D:]),
        "ca_wo": tw(p["ca_out_w"]), "ca_bo": rb(p["ca_out_b"]),
        "ln2_g": rb(p["ln2_g"]), "ln2_b": rb(p["ln2_b"]),
        # feed-forward
        "ff_w1": tw(p["ff1_w"]), "ff_b1": rb(p["ff1_b"]),
        "ff_w2": tw(p["ff2_w"]), "ff_b2": rb(p["ff2_b"]),
        "ln3_g": rb(p["ln3_g"]), "ln3_b": rb(p["ln3_b"]),
    }


if __name__ == "__main__":
    B, S_TGT, S_MEM = 2, 8, 8
    D_MODEL, NHEAD, DIM_FF, NUM_LAYERS = 32, 4, 64, 2

    root = jax.random.PRNGKey(0)
    k_tgt, k_mem, k_a, k_params = jax.random.split(root, 4)

    tgt = jax.random.normal(k_tgt, (B, S_TGT, D_MODEL), jnp.float32)
    memory = jax.random.normal(k_mem, (B, S_MEM, D_MODEL), jnp.float32)
    A_tgt = 0.1 * jax.random.normal(k_a, (B, S_TGT, S_TGT), jnp.float32)

    layer_keys = jax.random.split(k_params, NUM_LAYERS)
    layer_params = [
        prepare_layer_params(init_layer_params(k, D_MODEL, NHEAD, DIM_FF), NHEAD)
        for k in layer_keys]
    norm_params = {"g": jnp.ones((D_MODEL,), jnp.float32),
                   "b": jnp.zeros((D_MODEL,), jnp.float32)}

    out = transformer_decoder(tgt, memory, A_tgt, layer_params, NHEAD,
                              norm_params=norm_params)
    jax.block_until_ready(out)
    assert out.shape == (B, S_TGT, D_MODEL)
    assert bool(jnp.all(jnp.isfinite(out)))
    print("KERNEL_OK")
</pallas_src>

<mosaic_0001>
module attributes {stable_mosaic.version = 11 : i64} {
  func.func @_decoder_layer_kernel(%arg0: i32, %arg1: i32, %arg2: memref<1x8x32xf32, #tpu.memory_space<vmem>>, %arg3: memref<1x8x32xf32, #tpu.memory_space<vmem>>, %arg4: memref<1x8x32xf32, #tpu.memory_space<vmem>>, %arg5: memref<1x8x8xf32, #tpu.memory_space<vmem>>, %arg6: memref<32x32xbf16, #tpu.memory_space<vmem>>, %arg7: memref<1x32xf32, #tpu.memory_space<vmem>>, %arg8: memref<32x32xbf16, #tpu.memory_space<vmem>>, %arg9: memref<1x32xf32, #tpu.memory_space<vmem>>, %arg10: memref<32x32xbf16, #tpu.memory_space<vmem>>, %arg11: memref<1x32xf32, #tpu.memory_space<vmem>>, %arg12: memref<32x32xbf16, #tpu.memory_space<vmem>>, %arg13: memref<1x32xf32, #tpu.memory_space<vmem>>, %arg14: memref<1x32xf32, #tpu.memory_space<vmem>>, %arg15: memref<1x32xf32, #tpu.memory_space<vmem>>, %arg16: memref<32x32xbf16, #tpu.memory_space<vmem>>, %arg17: memref<1x32xf32, #tpu.memory_space<vmem>>, %arg18: memref<32x32xbf16, #tpu.memory_space<vmem>>, %arg19: memref<1x32xf32, #tpu.memory_space<vmem>>, %arg20: memref<32x32xbf16, #tpu.memory_space<vmem>>, %arg21: memref<1x32xf32, #tpu.memory_space<vmem>>, %arg22: memref<32x32xbf16, #tpu.memory_space<vmem>>, %arg23: memref<1x32xf32, #tpu.memory_space<vmem>>, %arg24: memref<1x32xf32, #tpu.memory_space<vmem>>, %arg25: memref<1x32xf32, #tpu.memory_space<vmem>>, %arg26: memref<32x64xbf16, #tpu.memory_space<vmem>>, %arg27: memref<1x64xf32, #tpu.memory_space<vmem>>, %arg28: memref<64x32xbf16, #tpu.memory_space<vmem>>, %arg29: memref<1x32xf32, #tpu.memory_space<vmem>>, %arg30: memref<1x32xf32, #tpu.memory_space<vmem>>, %arg31: memref<1x32xf32, #tpu.memory_space<vmem>>, %arg32: memref<1x8x32xf32, #tpu.memory_space<vmem>>) attributes {dimension_semantics = [#tpu.dimension_semantics<parallel>, #tpu.dimension_semantics<parallel>], iteration_bounds = array<i64: 2, 1>, scalar_prefetch = 0 : i64, scratch_operands = 0 : i64, tpu.core_type = #tpu.core_type<tc>, window_params = [{transform_indices = @transform_0, window_bounds = array<i64: 1, 8, 32>}, {transform_indices = @transform_1, window_bounds = array<i64: 1, 8, 32>}, {transform_indices = @transform_2, window_bounds = array<i64: 1, 8, 32>}, {transform_indices = @transform_3, window_bounds = array<i64: 1, 8, 8>}, {pipeline_mode = #tpu.pipeline_mode<synchronous>, transform_indices = @transform_4, window_bounds = array<i64: 32, 32>}, {pipeline_mode = #tpu.pipeline_mode<synchronous>, transform_indices = @transform_5, window_bounds = array<i64: 1, 32>}, {pipeline_mode = #tpu.pipeline_mode<synchronous>, transform_indices = @transform_6, window_bounds = array<i64: 32, 32>}, {pipeline_mode = #tpu.pipeline_mode<synchronous>, transform_indices = @transform_7, window_bounds = array<i64: 1, 32>}, {pipeline_mode = #tpu.pipeline_mode<synchronous>, transform_indices = @transform_8, window_bounds = array<i64: 32, 32>}, {pipeline_mode = #tpu.pipeline_mode<synchronous>, transform_indices = @transform_9, window_bounds = array<i64: 1, 32>}, {pipeline_mode = #tpu.pipeline_mode<synchronous>, transform_indices = @transform_10, window_bounds = array<i64: 32, 32>}, {pipeline_mode = #tpu.pipeline_mode<synchronous>, transform_indices = @transform_11, window_bounds = array<i64: 1, 32>}, {pipeline_mode = #tpu.pipeline_mode<synchronous>, transform_indices = @transform_12, window_bounds = array<i64: 1, 32>}, {pipeline_mode = #tpu.pipeline_mode<synchronous>, transform_indices = @transform_13, window_bounds = array<i64: 1, 32>}, {pipeline_mode = #tpu.pipeline_mode<synchronous>, transform_indices = @transform_14, window_bounds = array<i64: 32, 32>}, {pipeline_mode = #tpu.pipeline_mode<synchronous>, transform_indices = @transform_15, window_bounds = array<i64: 1, 32>}, {pipeline_mode = #tpu.pipeline_mode<synchronous>, transform_indices = @transform_16, window_bounds = array<i64: 32, 32>}, {pipeline_mode = #tpu.pipeline_mode<synchronous>, transform_indices = @transform_17, window_bounds = array<i64: 1, 32>}, {pipeline_mode = #tpu.pipeline_mode<synchronous>, transform_indices = @transform_18, window_bounds = array<i64: 32, 32>}, {pipeline_mode = #tpu.pipeline_mode<synchronous>, transform_indices = @transform_19, window_bounds = array<i64: 1, 32>}, {pipeline_mode = #tpu.pipeline_mode<synchronous>, transform_indices = @transform_20, window_bounds = array<i64: 32, 32>}, {pipeline_mode = #tpu.pipeline_mode<synchronous>, transform_indices = @transform_21, window_bounds = array<i64: 1, 32>}, {pipeline_mode = #tpu.pipeline_mode<synchronous>, transform_indices = @transform_22, window_bounds = array<i64: 1, 32>}, {pipeline_mode = #tpu.pipeline_mode<synchronous>, transform_indices = @transform_23, window_bounds = array<i64: 1, 32>}, {pipeline_mode = #tpu.pipeline_mode<synchronous>, transform_indices = @transform_24, window_bounds = array<i64: 32, 64>}, {pipeline_mode = #tpu.pipeline_mode<synchronous>, transform_indices = @transform_25, window_bounds = array<i64: 1, 64>}, {pipeline_mode = #tpu.pipeline_mode<synchronous>, transform_indices = @transform_26, window_bounds = array<i64: 64, 32>}, {pipeline_mode = #tpu.pipeline_mode<synchronous>, transform_indices = @transform_27, window_bounds = array<i64: 1, 32>}, {pipeline_mode = #tpu.pipeline_mode<synchronous>, transform_indices = @transform_28, window_bounds = array<i64: 1, 32>}, {pipeline_mode = #tpu.pipeline_mode<synchronous>, transform_indices = @transform_29, window_bounds = array<i64: 1, 32>}, {transform_indices = @transform_30, window_bounds = array<i64: 1, 8, 32>}]} {
    %c0 = arith.constant 0 : index
    %c0_0 = arith.constant 0 : index
    %c0_1 = arith.constant 0 : index
    %0 = vector.load %arg2[%c0, %c0_0, %c0_1] : memref<1x8x32xf32, #tpu.memory_space<vmem>>, vector<1x8x32xf32>
    %1 = vector.shape_cast %0 : vector<1x8x32xf32> to vector<8x32xf32>
    %c0_2 = arith.constant 0 : index
    %c0_3 = arith.constant 0 : index
    %c0_4 = arith.constant 0 : index
    %2 = vector.load %arg3[%c0_2, %c0_3, %c0_4] : memref<1x8x32xf32, #tpu.memory_space<vmem>>, vector<1x8x32xf32>
    %3 = vector.shape_cast %2 : vector<1x8x32xf32> to vector<8x32xf32>
    %c0_5 = arith.constant 0 : index
    %c0_6 = arith.constant 0 : index
    %c0_7 = arith.constant 0 : index
    %4 = vector.load %arg4[%c0_5, %c0_6, %c0_7] : memref<1x8x32xf32, #tpu.memory_space<vmem>>, vector<1x8x32xf32>
    %5 = vector.shape_cast %4 : vector<1x8x32xf32> to vector<8x32xf32>
    %c0_8 = arith.constant 0 : index
    %c0_9 = arith.constant 0 : index
    %c0_10 = arith.constant 0 : index
    %6 = vector.load %arg5[%c0_8, %c0_9, %c0_10] : memref<1x8x8xf32, #tpu.memory_space<vmem>>, vector<1x8x8xf32>
    %7 = vector.shape_cast %6 : vector<1x8x8xf32> to vector<8x8xf32>
    %8 = arith.truncf %1 : vector<8x32xf32> to vector<8x32xbf16>
    %9 = arith.truncf %3 : vector<8x32xf32> to vector<8x32xbf16>
    %10 = arith.truncf %5 : vector<8x32xf32> to vector<8x32xbf16>
    %c0_11 = arith.constant 0 : index
    %c0_12 = arith.constant 0 : index
    %11 = vector.load %arg6[%c0_11, %c0_12] : memref<32x32xbf16, #tpu.memory_space<vmem>>, vector<32x32xbf16>
    %cst = arith.constant dense<0.000000e+00> : vector<8x32xf32>
    %12 = tpu.matmul %8, %11, %cst {dimension_numbers = #tpu.dot_dimension_numbers<[1], [0], [0], [1], [0, 0, 1, 1], [], []>} : vector<8x32xbf16>, vector<32x32xbf16>, vector<8x32xf32> -> vector<8x32xf32>
    %c0_13 = arith.constant 0 : index
    %c0_14 = arith.constant 0 : index
    %13 = vector.load %arg7[%c0_13, %c0_14] : memref<1x32xf32, #tpu.memory_space<vmem>>, vector<1x32xf32>
    %14 = vector.broadcast %13 : vector<1x32xf32> to vector<8x32xf32>
    %15 = arith.addf %12, %14 : vector<8x32xf32>
    %c0_15 = arith.constant 0 : index
    %c0_16 = arith.constant 0 : index
    %16 = vector.load %arg8[%c0_15, %c0_16] : memref<32x32xbf16, #tpu.memory_space<vmem>>, vector<32x32xbf16>
    %cst_17 = arith.constant dense<0.000000e+00> : vector<8x32xf32>
    %17 = tpu.matmul %9, %16, %cst_17 {dimension_numbers = #tpu.dot_dimension_numbers<[1], [0], [0], [1], [0, 0, 1, 1], [], []>} : vector<8x32xbf16>, vector<32x32xbf16>, vector<8x32xf32> -> vector<8x32xf32>
    %c0_18 = arith.constant 0 : index
    %c0_19 = arith.constant 0 : index
    %18 = vector.load %arg9[%c0_18, %c0_19] : memref<1x32xf32, #tpu.memory_space<vmem>>, vector<1x32xf32>
    %19 = vector.broadcast %18 : vector<1x32xf32> to vector<8x32xf32>
    %20 = arith.addf %17, %19 : vector<8x32xf32>
    %c0_20 = arith.constant 0 : index
    %c0_21 = arith.constant 0 : index
    %21 = vector.load %arg10[%c0_20, %c0_21] : memref<32x32xbf16, #tpu.memory_space<vmem>>, vector<32x32xbf16>
    %cst_22 = arith.constant dense<0.000000e+00> : vector<8x32xf32>
    %22 = tpu.matmul %9, %21, %cst_22 {dimension_numbers = #tpu.dot_dimension_numbers<[1], [0], [0], [1], [0, 0, 1, 1], [], []>} : vector<8x32xbf16>, vector<32x32xbf16>, vector<8x32xf32> -> vector<8x32xf32>
    %c0_23 = arith.constant 0 : index
    %c0_24 = arith.constant 0 : index
    %23 = vector.load %arg11[%c0_23, %c0_24] : memref<1x32xf32, #tpu.memory_space<vmem>>, vector<1x32xf32>
    %24 = vector.broadcast %23 : vector<1x32xf32> to vector<8x32xf32>
    %25 = arith.addf %22, %24 : vector<8x32xf32>
    %26 = vector.shape_cast %15 : vector<8x32xf32> to vector<8x4x8xf32>
    %27 = tpu.transpose %26, [1, 0, 2] : vector<8x4x8xf32> -> vector<4x8x8xf32>
    %28 = arith.truncf %27 : vector<4x8x8xf32> to vector<4x8x8xbf16>
    %29 = vector.shape_cast %20 : vector<8x32xf32> to vector<8x4x8xf32>
    %30 = tpu.transpose %29, [1, 0, 2] : vector<8x4x8xf32> -> vector<4x8x8xf32>
    %31 = arith.truncf %30 : vector<4x8x8xf32> to vector<4x8x8xbf16>
    %32 = vector.shape_cast %25 : vector<8x32xf32> to vector<8x4x8xf32>
    %33 = tpu.transpose %32, [1, 0, 2] : vector<8x4x8xf32> -> vector<4x8x8xf32>
    %34 = arith.truncf %33 : vector<4x8x8xf32> to vector<4x8x8xbf16>
    "tpu.trace_start"() <{level = 10 : i32, message = "hqd,hkd->hqk"}> : () -> ()
    %cst_25 = arith.constant dense<0.000000e+00> : vector<4x8x8xf32>
    %35 = tpu.matmul %28, %31, %cst_25 {dimension_numbers = #tpu.dot_dimension_numbers<[2], [2], [1], [1], [0, 0, 0, 1, 1, 1], [0], [0]>} : vector<4x8x8xbf16>, vector<4x8x8xbf16>, vector<4x8x8xf32> -> vector<4x8x8xf32>
    "tpu.trace_stop"() : () -> ()
    %36 = vector.shape_cast %7 : vector<8x8xf32> to vector<1x8x8xf32>
    %37 = vector.broadcast %36 : vector<1x8x8xf32> to vector<4x8x8xf32>
    %38 = arith.addf %35, %37 : vector<4x8x8xf32>
    %cst_26 = arith.constant dense<0xFF800000> : vector<4x8xf32>
    %39 = vector.multi_reduction <maximumf>, %38, %cst_26 [2] : vector<4x8x8xf32> to vector<4x8xf32>
    %40 = vector.shape_cast %39 : vector<4x8xf32> to vector<4x8x1xf32>
    %41 = vector.broadcast %40 : vector<4x8x1xf32> to vector<4x8x8xf32>
    %42 = arith.subf %38, %41 : vector<4x8x8xf32>
    %43 = math.exp %42 : vector<4x8x8xf32>
    %cst_27 = arith.constant dense<0.000000e+00> : vector<4x8xf32>
    %44 = vector.multi_reduction <add>, %43, %cst_27 [2] : vector<4x8x8xf32> to vector<4x8xf32>
    %45 = vector.shape_cast %44 : vector<4x8xf32> to vector<4x8x1xf32>
    %46 = tpu.reciprocal %45 {approx = true} : vector<4x8x1xf32> -> vector<4x8x1xf32>
    %47 = vector.broadcast %46 : vector<4x8x1xf32> to vector<4x8x8xf32>
    %48 = arith.mulf %43, %47 : vector<4x8x8xf32>
    %49 = arith.truncf %48 : vector<4x8x8xf32> to vector<4x8x8xbf16>
    "tpu.trace_start"() <{level = 10 : i32, message = "hqk,hkd->hqd"}> : () -> ()
    %cst_28 = arith.constant dense<0.000000e+00> : vector<4x8x8xf32>
    %50 = tpu.matmul %49, %34, %cst_28 {dimension_numbers = #tpu.dot_dimension_numbers<[2], [1], [1], [2], [0, 0, 0, 1, 1, 2], [0], [0]>} : vector<4x8x8xbf16>, vector<4x8x8xbf16>, vector<4x8x8xf32> -> vector<4x8x8xf32>
    "tpu.trace_stop"() : () -> ()
    %51 = tpu.transpose %50, [1, 0, 2] : vector<4x8x8xf32> -> vector<8x4x8xf32>
    %52 = vector.shape_cast %51 : vector<8x4x8xf32> to vector<8x32xf32>
    %53 = arith.truncf %52 : vector<8x32xf32> to vector<8x32xbf16>
    %c0_29 = arith.constant 0 : index
    %c0_30 = arith.constant 0 : index
    %54 = vector.load %arg12[%c0_29, %c0_30] : memref<32x32xbf16, #tpu.memory_space<vmem>>, vector<32x32xbf16>
    %cst_31 = arith.constant dense<0.000000e+00> : vector<8x32xf32>
    %55 = tpu.matmul %53, %54, %cst_31 {dimension_numbers = #tpu.dot_dimension_numbers<[1], [0], [0], [1], [0, 0, 1, 1], [], []>} : vector<8x32xbf16>, vector<32x32xbf16>, vector<8x32xf32> -> vector<8x32xf32>
    %c0_32 = arith.constant 0 : index
    %c0_33 = arith.constant 0 : index
    %56 = vector.load %arg13[%c0_32, %c0_33] : memref<1x32xf32, #tpu.memory_space<vmem>>, vector<1x32xf32>
    %57 = vector.broadcast %56 : vector<1x32xf32> to vector<8x32xf32>
    %58 = arith.addf %55, %57 : vector<8x32xf32>
    %59 = arith.addf %1, %58 : vector<8x32xf32>
    %c0_34 = arith.constant 0 : index
    %c0_35 = arith.constant 0 : index
    %60 = vector.load %arg14[%c0_34, %c0_35] : memref<1x32xf32, #tpu.memory_space<vmem>>, vector<1x32xf32>
    %c0_36 = arith.constant 0 : index
    %c0_37 = arith.constant 0 : index
    %61 = vector.load %arg15[%c0_36, %c0_37] : memref<1x32xf32, #tpu.memory_space<vmem>>, vector<1x32xf32>
    %cst_38 = arith.constant dense<0.000000e+00> : vector<8xf32>
    %62 = vector.multi_reduction <add>, %59, %cst_38 [1] : vector<8x32xf32> to vector<8xf32>
    %63 = vector.shape_cast %62 : vector<8xf32> to vector<8x1xf32>
    %cst_39 = arith.constant 3.200000e+01 : f32
    %64 = vector.broadcast %cst_39 : f32 to vector<8x1xf32>
    %65 = arith.divf %63, %64 : vector<8x1xf32>
    %66 = arith.mulf %59, %59 : vector<8x32xf32>
    %cst_40 = arith.constant dense<0.000000e+00> : vector<8xf32>
    %67 = vector.multi_reduction <add>, %66, %cst_40 [1] : vector<8x32xf32> to vector<8xf32>
    %68 = vector.shape_cast %67 : vector<8xf32> to vector<8x1xf32>
    %cst_41 = arith.constant 3.200000e+01 : f32
    %69 = vector.broadcast %cst_41 : f32 to vector<8x1xf32>
    %70 = arith.divf %68, %69 : vector<8x1xf32>
    %71 = arith.mulf %65, %65 : vector<8x1xf32>
    %72 = arith.subf %70, %71 : vector<8x1xf32>
    %73 = vector.broadcast %65 : vector<8x1xf32> to vector<8x32xf32>
    %74 = arith.subf %59, %73 : vector<8x32xf32>
    %cst_42 = arith.constant 9.99999974E-6 : f32
    %75 = vector.broadcast %cst_42 : f32 to vector<8x1xf32>
    %76 = arith.addf %72, %75 : vector<8x1xf32>
    %77 = math.rsqrt %76 : vector<8x1xf32>
    %78 = vector.broadcast %77 : vector<8x1xf32> to vector<8x32xf32>
    %79 = arith.mulf %74, %78 : vector<8x32xf32>
    %80 = vector.broadcast %60 : vector<1x32xf32> to vector<8x32xf32>
    %81 = arith.mulf %79, %80 : vector<8x32xf32>
    %82 = vector.broadcast %61 : vector<1x32xf32> to vector<8x32xf32>
    %83 = arith.addf %81, %82 : vector<8x32xf32>
    %84 = arith.truncf %83 : vector<8x32xf32> to vector<8x32xbf16>
    %c0_43 = arith.constant 0 : index
    %c0_44 = arith.constant 0 : index
    %85 = vector.load %arg16[%c0_43, %c0_44] : memref<32x32xbf16, #tpu.memory_space<vmem>>, vector<32x32xbf16>
    %cst_45 = arith.constant dense<0.000000e+00> : vector<8x32xf32>
    %86 = tpu.matmul %84, %85, %cst_45 {dimension_numbers = #tpu.dot_dimension_numbers<[1], [0], [0], [1], [0, 0, 1, 1], [], []>} : vector<8x32xbf16>, vector<32x32xbf16>, vector<8x32xf32> -> vector<8x32xf32>
    %c0_46 = arith.constant 0 : index
    %c0_47 = arith.constant 0 : index
    %87 = vector.load %arg17[%c0_46, %c0_47] : memref<1x32xf32, #tpu.memory_space<vmem>>, vector<1x32xf32>
    %88 = vector.broadcast %87 : vector<1x32xf32> to vector<8x32xf32>
    %89 = arith.addf %86, %88 : vector<8x32xf32>
    %c0_48 = arith.constant 0 : index
    %c0_49 = arith.constant 0 : index
    %90 = vector.load %arg18[%c0_48, %c0_49] : memref<32x32xbf16, #tpu.memory_space<vmem>>, vector<32x32xbf16>
    %cst_50 = arith.constant dense<0.000000e+00> : vector<8x32xf32>
    %91 = tpu.matmul %10, %90, %cst_50 {dimension_numbers = #tpu.dot_dimension_numbers<[1], [0], [0], [1], [0, 0, 1, 1], [], []>} : vector<8x32xbf16>, vector<32x32xbf16>, vector<8x32xf32> -> vector<8x32xf32>
    %c0_51 = arith.constant 0 : index
    %c0_52 = arith.constant 0 : index
    %92 = vector.load %arg19[%c0_51, %c0_52] : memref<1x32xf32, #tpu.memory_space<vmem>>, vector<1x32xf32>
    %93 = vector.broadcast %92 : vector<1x32xf32> to vector<8x32xf32>
    %94 = arith.addf %91, %93 : vector<8x32xf32>
    %c0_53 = arith.constant 0 : index
    %c0_54 = arith.constant 0 : index
    %95 = vector.load %arg20[%c0_53, %c0_54] : memref<32x32xbf16, #tpu.memory_space<vmem>>, vector<32x32xbf16>
    %cst_55 = arith.constant dense<0.000000e+00> : vector<8x32xf32>
    %96 = tpu.matmul %10, %95, %cst_55 {dimension_numbers = #tpu.dot_dimension_numbers<[1], [0], [0], [1], [0, 0, 1, 1], [], []>} : vector<8x32xbf16>, vector<32x32xbf16>, vector<8x32xf32> -> vector<8x32xf32>
    %c0_56 = arith.constant 0 : index
    %c0_57 = arith.constant 0 : index
    %97 = vector.load %arg21[%c0_56, %c0_57] : memref<1x32xf32, #tpu.memory_space<vmem>>, vector<1x32xf32>
    %98 = vector.broadcast %97 : vector<1x32xf32> to vector<8x32xf32>
    %99 = arith.addf %96, %98 : vector<8x32xf32>
    %100 = vector.shape_cast %89 : vector<8x32xf32> to vector<8x4x8xf32>
    %101 = tpu.transpose %100, [1, 0, 2] : vector<8x4x8xf32> -> vector<4x8x8xf32>
    %102 = arith.truncf %101 : vector<4x8x8xf32> to vector<4x8x8xbf16>
    %103 = vector.shape_cast %94 : vector<8x32xf32> to vector<8x4x8xf32>
    %104 = tpu.transpose %103, [1, 0, 2] : vector<8x4x8xf32> -> vector<4x8x8xf32>
    %105 = arith.truncf %104 : vector<4x8x8xf32> to vector<4x8x8xbf16>
    %106 = vector.shape_cast %99 : vector<8x32xf32> to vector<8x4x8xf32>
    %107 = tpu.transpose %106, [1, 0, 2] : vector<8x4x8xf32> -> vector<4x8x8xf32>
    %108 = arith.truncf %107 : vector<4x8x8xf32> to vector<4x8x8xbf16>
    "tpu.trace_start"() <{level = 10 : i32, message = "hqd,hkd->hqk"}> : () -> ()
    %cst_58 = arith.constant dense<0.000000e+00> : vector<4x8x8xf32>
    %109 = tpu.matmul %102, %105, %cst_58 {dimension_numbers = #tpu.dot_dimension_numbers<[2], [2], [1], [1], [0, 0, 0, 1, 1, 1], [0], [0]>} : vector<4x8x8xbf16>, vector<4x8x8xbf16>, vector<4x8x8xf32> -> vector<4x8x8xf32>
    "tpu.trace_stop"() : () -> ()
    %cst_59 = arith.constant dense<0xFF800000> : vector<4x8xf32>
    %110 = vector.multi_reduction <maximumf>, %109, %cst_59 [2] : vector<4x8x8xf32> to vector<4x8xf32>
    %111 = vector.shape_cast %110 : vector<4x8xf32> to vector<4x8x1xf32>
    %112 = vector.broadcast %111 : vector<4x8x1xf32> to vector<4x8x8xf32>
    %113 = arith.subf %109, %112 : vector<4x8x8xf32>
    %114 = math.exp %113 : vector<4x8x8xf32>
    %cst_60 = arith.constant dense<0.000000e+00> : vector<4x8xf32>
    %115 = vector.multi_reduction <add>, %114, %cst_60 [2] : vector<4x8x8xf32> to vector<4x8xf32>
    %116 = vector.shape_cast %115 : vector<4x8xf32> to vector<4x8x1xf32>
    %117 = tpu.reciprocal %116 {approx = true} : vector<4x8x1xf32> -> vector<4x8x1xf32>
    %118 = vector.broadcast %117 : vector<4x8x1xf32> to vector<4x8x8xf32>
    %119 = arith.mulf %114, %118 : vector<4x8x8xf32>
    %120 = arith.truncf %119 : vector<4x8x8xf32> to vector<4x8x8xbf16>
    "tpu.trace_start"() <{level = 10 : i32, message = "hqk,hkd->hqd"}> : () -> ()
    %cst_61 = arith.constant dense<0.000000e+00> : vector<4x8x8xf32>
    %121 = tpu.matmul %120, %108, %cst_61 {dimension_numbers = #tpu.dot_dimension_numbers<[2], [1], [1], [2], [0, 0, 0, 1, 1, 2], [0], [0]>} : vector<4x8x8xbf16>, vector<4x8x8xbf16>, vector<4x8x8xf32> -> vector<4x8x8xf32>
    "tpu.trace_stop"() : () -> ()
    %122 = tpu.transpose %121, [1, 0, 2] : vector<4x8x8xf32> -> vector<8x4x8xf32>
    %123 = vector.shape_cast %122 : vector<8x4x8xf32> to vector<8x32xf32>
    %124 = arith.truncf %123 : vector<8x32xf32> to vector<8x32xbf16>
    %c0_62 = arith.constant 0 : index
    %c0_63 = arith.constant 0 : index
    %125 = vector.load %arg22[%c0_62, %c0_63] : memref<32x32xbf16, #tpu.memory_space<vmem>>, vector<32x32xbf16>
    %cst_64 = arith.constant dense<0.000000e+00> : vector<8x32xf32>
    %126 = tpu.matmul %124, %125, %cst_64 {dimension_numbers = #tpu.dot_dimension_numbers<[1], [0], [0], [1], [0, 0, 1, 1], [], []>} : vector<8x32xbf16>, vector<32x32xbf16>, vector<8x32xf32> -> vector<8x32xf32>
    %c0_65 = arith.constant 0 : index
    %c0_66 = arith.constant 0 : index
    %127 = vector.load %arg23[%c0_65, %c0_66] : memref<1x32xf32, #tpu.memory_space<vmem>>, vector<1x32xf32>
    %128 = vector.broadcast %127 : vector<1x32xf32> to vector<8x32xf32>
    %129 = arith.addf %126, %128 : vector<8x32xf32>
    %130 = arith.addf %83, %129 : vector<8x32xf32>
    %c0_67 = arith.constant 0 : index
    %c0_68 = arith.constant 0 : index
    %131 = vector.load %arg24[%c0_67, %c0_68] : memref<1x32xf32, #tpu.memory_space<vmem>>, vector<1x32xf32>
    %c0_69 = arith.constant 0 : index
    %c0_70 = arith.constant 0 : index
    %132 = vector.load %arg25[%c0_69, %c0_70] : memref<1x32xf32, #tpu.memory_space<vmem>>, vector<1x32xf32>
    %cst_71 = arith.constant dense<0.000000e+00> : vector<8xf32>
    %133 = vector.multi_reduction <add>, %130, %cst_71 [1] : vector<8x32xf32> to vector<8xf32>
    %134 = vector.shape_cast %133 : vector<8xf32> to vector<8x1xf32>
    %cst_72 = arith.constant 3.200000e+01 : f32
    %135 = vector.broadcast %cst_72 : f32 to vector<8x1xf32>
    %136 = arith.divf %134, %135 : vector<8x1xf32>
    %137 = arith.mulf %130, %130 : vector<8x32xf32>
    %cst_73 = arith.constant dense<0.000000e+00> : vector<8xf32>
    %138 = vector.multi_reduction <add>, %137, %cst_73 [1] : vector<8x32xf32> to vector<8xf32>
    %139 = vector.shape_cast %138 : vector<8xf32> to vector<8x1xf32>
    %cst_74 = arith.constant 3.200000e+01 : f32
    %140 = vector.broadcast %cst_74 : f32 to vector<8x1xf32>
    %141 = arith.divf %139, %140 : vector<8x1xf32>
    %142 = arith.mulf %136, %136 : vector<8x1xf32>
    %143 = arith.subf %141, %142 : vector<8x1xf32>
    %144 = vector.broadcast %136 : vector<8x1xf32> to vector<8x32xf32>
    %145 = arith.subf %130, %144 : vector<8x32xf32>
    %cst_75 = arith.constant 9.99999974E-6 : f32
    %146 = vector.broadcast %cst_75 : f32 to vector<8x1xf32>
    %147 = arith.addf %143, %146 : vector<8x1xf32>
    %148 = math.rsqrt %147 : vector<8x1xf32>
    %149 = vector.broadcast %148 : vector<8x1xf32> to vector<8x32xf32>
    %150 = arith.mulf %145, %149 : vector<8x32xf32>
    %151 = vector.broadcast %131 : vector<1x32xf32> to vector<8x32xf32>
    %152 = arith.mulf %150, %151 : vector<8x32xf32>
    %153 = vector.broadcast %132 : vector<1x32xf32> to vector<8x32xf32>
    %154 = arith.addf %152, %153 : vector<8x32xf32>
    %155 = arith.truncf %154 : vector<8x32xf32> to vector<8x32xbf16>
    %c0_76 = arith.constant 0 : index
    %c0_77 = arith.constant 0 : index
    %156 = vector.load %arg26[%c0_76, %c0_77] : memref<32x64xbf16, #tpu.memory_space<vmem>>, vector<32x64xbf16>
    %cst_78 = arith.constant dense<0.000000e+00> : vector<8x64xf32>
    %157 = tpu.matmul %155, %156, %cst_78 {dimension_numbers = #tpu.dot_dimension_numbers<[1], [0], [0], [1], [0, 0, 1, 1], [], []>} : vector<8x32xbf16>, vector<32x64xbf16>, vector<8x64xf32> -> vector<8x64xf32>
    %c0_79 = arith.constant 0 : index
    %c0_80 = arith.constant 0 : index
    %158 = vector.load %arg27[%c0_79, %c0_80] : memref<1x64xf32, #tpu.memory_space<vmem>>, vector<1x64xf32>
    %159 = vector.broadcast %158 : vector<1x64xf32> to vector<8x64xf32>
    %160 = arith.addf %157, %159 : vector<8x64xf32>
    %cst_81 = arith.constant 0.000000e+00 : f32
    %161 = vector.broadcast %cst_81 : f32 to vector<8x64xf32>
    %162 = arith.maximumf %160, %161 : vector<8x64xf32>
    %163 = arith.truncf %162 : vector<8x64xf32> to vector<8x64xbf16>
    %c0_82 = arith.constant 0 : index
    %c0_83 = arith.constant 0 : index
    %164 = vector.load %arg28[%c0_82, %c0_83] : memref<64x32xbf16, #tpu.memory_space<vmem>>, vector<64x32xbf16>
    %cst_84 = arith.constant dense<0.000000e+00> : vector<8x32xf32>
    %165 = tpu.matmul %163, %164, %cst_84 {dimension_numbers = #tpu.dot_dimension_numbers<[1], [0], [0], [1], [0, 0, 1, 1], [], []>} : vector<8x64xbf16>, vector<64x32xbf16>, vector<8x32xf32> -> vector<8x32xf32>
    %c0_85 = arith.constant 0 : index
    %c0_86 = arith.constant 0 : index
    %166 = vector.load %arg29[%c0_85, %c0_86] : memref<1x32xf32, #tpu.memory_space<vmem>>, vector<1x32xf32>
    %167 = vector.broadcast %166 : vector<1x32xf32> to vector<8x32xf32>
    %168 = arith.addf %165, %167 : vector<8x32xf32>
    %169 = arith.addf %154, %168 : vector<8x32xf32>
    %c0_87 = arith.constant 0 : index
    %c0_88 = arith.constant 0 : index
    %170 = vector.load %arg30[%c0_87, %c0_88] : memref<1x32xf32, #tpu.memory_space<vmem>>, vector<1x32xf32>
    %c0_89 = arith.constant 0 : index
    %c0_90 = arith.constant 0 : index
    %171 = vector.load %arg31[%c0_89, %c0_90] : memref<1x32xf32, #tpu.memory_space<vmem>>, vector<1x32xf32>
    %cst_91 = arith.constant dense<0.000000e+00> : vector<8xf32>
    %172 = vector.multi_reduction <add>, %169, %cst_91 [1] : vector<8x32xf32> to vector<8xf32>
    %173 = vector.shape_cast %172 : vector<8xf32> to vector<8x1xf32>
    %cst_92 = arith.constant 3.200000e+01 : f32
    %174 = vector.broadcast %cst_92 : f32 to vector<8x1xf32>
    %175 = arith.divf %173, %174 : vector<8x1xf32>
    %176 = arith.mulf %169, %169 : vector<8x32xf32>
    %cst_93 = arith.constant dense<0.000000e+00> : vector<8xf32>
    %177 = vector.multi_reduction <add>, %176, %cst_93 [1] : vector<8x32xf32> to vector<8xf32>
    %178 = vector.shape_cast %177 : vector<8xf32> to vector<8x1xf32>
    %cst_94 = arith.constant 3.200000e+01 : f32
    %179 = vector.broadcast %cst_94 : f32 to vector<8x1xf32>
    %180 = arith.divf %178, %179 : vector<8x1xf32>
    %181 = arith.mulf %175, %175 : vector<8x1xf32>
    %182 = arith.subf %180, %181 : vector<8x1xf32>
    %183 = vector.broadcast %175 : vector<8x1xf32> to vector<8x32xf32>
    %184 = arith.subf %169, %183 : vector<8x32xf32>
    %cst_95 = arith.constant 9.99999974E-6 : f32
    %185 = vector.broadcast %cst_95 : f32 to vector<8x1xf32>
    %186 = arith.addf %182, %185 : vector<8x1xf32>
    %187 = math.rsqrt %186 : vector<8x1xf32>
    %188 = vector.broadcast %187 : vector<8x1xf32> to vector<8x32xf32>
    %189 = arith.mulf %184, %188 : vector<8x32xf32>
    %190 = vector.broadcast %170 : vector<1x32xf32> to vector<8x32xf32>
    %191 = arith.mulf %189, %190 : vector<8x32xf32>
    %192 = vector.broadcast %171 : vector<1x32xf32> to vector<8x32xf32>
    %193 = arith.addf %191, %192 : vector<8x32xf32>
    %c0_96 = arith.constant 0 : index
    %c0_97 = arith.constant 0 : index
    %c0_98 = arith.constant 0 : index
    %194 = vector.load %arg32[%c0_96, %c0_97, %c0_98] : memref<1x8x32xf32, #tpu.memory_space<vmem>>, vector<1x8x32xf32>
    %195 = vector.shape_cast %194 : vector<1x8x32xf32> to vector<8x32xf32>
    %196 = vector.shape_cast %193 : vector<8x32xf32> to vector<1x8x32xf32>
    tpu.vector_store %arg32[%c0_96, %c0_97, %c0_98], %196 {strides = array<i32>} : memref<1x8x32xf32, #tpu.memory_space<vmem>>, vector<1x8x32xf32>,
    return
  }
  func.func @transform_0(%arg0: i32, %arg1: i32) -> (i32, i32, i32) {
    %c0_i32 = arith.constant 0 : i32
    %c0_i32_0 = arith.constant 0 : i32
    return %arg0, %arg1, %c0_i32 : i32, i32, i32
  }
  func.func @transform_1(%arg0: i32, %arg1: i32) -> (i32, i32, i32) {
    %c0_i32 = arith.constant 0 : i32
    %c0_i32_0 = arith.constant 0 : i32
    %c0_i32_1 = arith.constant 0 : i32
    return %arg0, %c0_i32, %c0_i32_0 : i32, i32, i32
  }
  func.func @transform_2(%arg0: i32, %arg1: i32) -> (i32, i32, i32) {
    %c0_i32 = arith.constant 0 : i32
    %c0_i32_0 = arith.constant 0 : i32
    %c0_i32_1 = arith.constant 0 : i32
    return %arg0, %c0_i32, %c0_i32_0 : i32, i32, i32
  }
  func.func @transform_3(%arg0: i32, %arg1: i32) -> (i32, i32, i32) {
    %c0_i32 = arith.constant 0 : i32
    %c0_i32_0 = arith.constant 0 : i32
    return %arg0, %arg1, %c0_i32 : i32, i32, i32
  }
  func.func @transform_4(%arg0: i32, %arg1: i32) -> (i32, i32) {
    %c0_i32 = arith.constant 0 : i32
    %c0_i32_0 = arith.constant 0 : i32
    %c0_i32_1 = arith.constant 0 : i32
    return %c0_i32, %c0_i32_0 : i32, i32
  }
  func.func @transform_5(%arg0: i32, %arg1: i32) -> (i32, i32) {
    %c0_i32 = arith.constant 0 : i32
    %c0_i32_0 = arith.constant 0 : i32
    %c0_i32_1 = arith.constant 0 : i32
    return %c0_i32, %c0_i32_0 : i32, i32
  }
  func.func @transform_6(%arg0: i32, %arg1: i32) -> (i32, i32) {
    %c0_i32 = arith.constant 0 : i32
    %c0_i32_0 = arith.constant 0 : i32
    %c0_i32_1 = arith.constant 0 : i32
    return %c0_i32, %c0_i32_0 : i32, i32
  }
  func.func @transform_7(%arg0: i32, %arg1: i32) -> (i32, i32) {
    %c0_i32 = arith.constant 0 : i32
    %c0_i32_0 = arith.constant 0 : i32
    %c0_i32_1 = arith.constant 0 : i32
    return %c0_i32, %c0_i32_0 : i32, i32
  }
  func.func @transform_8(%arg0: i32, %arg1: i32) -> (i32, i32) {
    %c0_i32 = arith.constant 0 : i32
    %c0_i32_0 = arith.constant 0 : i32
    %c0_i32_1 = arith.constant 0 : i32
    return %c0_i32, %c0_i32_0 : i32, i32
  }
  func.func @transform_9(%arg0: i32, %arg1: i32) -> (i32, i32) {
    %c0_i32 = arith.constant 0 : i32
    %c0_i32_0 = arith.constant 0 : i32
    %c0_i32_1 = arith.constant 0 : i32
    return %c0_i32, %c0_i32_0 : i32, i32
  }
  func.func @transform_10(%arg0: i32, %arg1: i32) -> (i32, i32) {
    %c0_i32 = arith.constant 0 : i32
    %c0_i32_0 = arith.constant 0 : i32
    %c0_i32_1 = arith.constant 0 : i32
    return %c0_i32, %c0_i32_0 : i32, i32
  }
  func.func @transform_11(%arg0: i32, %arg1: i32) -> (i32, i32) {
    %c0_i32 = arith.constant 0 : i32
    %c0_i32_0 = arith.constant 0 : i32
    %c0_i32_1 = arith.constant 0 : i32
    return %c0_i32, %c0_i32_0 : i32, i32
  }
  func.func @transform_12(%arg0: i32, %arg1: i32) -> (i32, i32) {
    %c0_i32 = arith.constant 0 : i32
    %c0_i32_0 = arith.constant 0 : i32
    %c0_i32_1 = arith.constant 0 : i32
    return %c0_i32, %c0_i32_0 : i32, i32
  }
  func.func @transform_13(%arg0: i32, %arg1: i32) -> (i32, i32) {
    %c0_i32 = arith.constant 0 : i32
    %c0_i32_0 = arith.constant 0 : i32
    %c0_i32_1 = arith.constant 0 : i32
    return %c0_i32, %c0_i32_0 : i32, i32
  }
  func.func @transform_14(%arg0: i32, %arg1: i32) -> (i32, i32) {
    %c0_i32 = arith.constant 0 : i32
    %c0_i32_0 = arith.constant 0 : i32
    %c0_i32_1 = arith.constant 0 : i32
    return %c0_i32, %c0_i32_0 : i32, i32
  }
  func.func @transform_15(%arg0: i32, %arg1: i32) -> (i32, i32) {
    %c0_i32 = arith.constant 0 : i32
    %c0_i32_0 = arith.constant 0 : i32
    %c0_i32_1 = arith.constant 0 : i32
    return %c0_i32, %c0_i32_0 : i32, i32
  }
  func.func @transform_16(%arg0: i32, %arg1: i32) -> (i32, i32) {
    %c0_i32 = arith.constant 0 : i32
    %c0_i32_0 = arith.constant 0 : i32
    %c0_i32_1 = arith.constant 0 : i32
    return %c0_i32, %c0_i32_0 : i32, i32
  }
  func.func @transform_17(%arg0: i32, %arg1: i32) -> (i32, i32) {
    %c0_i32 = arith.constant 0 : i32
    %c0_i32_0 = arith.constant 0 : i32
    %c0_i32_1 = arith.constant 0 : i32
    return %c0_i32, %c0_i32_0 : i32, i32
  }
  func.func @transform_18(%arg0: i32, %arg1: i32) -> (i32, i32) {
    %c0_i32 = arith.constant 0 : i32
    %c0_i32_0 = arith.constant 0 : i32
    %c0_i32_1 = arith.constant 0 : i32
    return %c0_i32, %c0_i32_0 : i32, i32
  }
  func.func @transform_19(%arg0: i32, %arg1: i32) -> (i32, i32) {
    %c0_i32 = arith.constant 0 : i32
    %c0_i32_0 = arith.constant 0 : i32
    %c0_i32_1 = arith.constant 0 : i32
    return %c0_i32, %c0_i32_0 : i32, i32
  }
  func.func @transform_20(%arg0: i32, %arg1: i32) -> (i32, i32) {
    %c0_i32 = arith.constant 0 : i32
    %c0_i32_0 = arith.constant 0 : i32
    %c0_i32_1 = arith.constant 0 : i32
    return %c0_i32, %c0_i32_0 : i32, i32
  }
  func.func @transform_21(%arg0: i32, %arg1: i32) -> (i32, i32) {
    %c0_i32 = arith.constant 0 : i32
    %c0_i32_0 = arith.constant 0 : i32
    %c0_i32_1 = arith.constant 0 : i32
    return %c0_i32, %c0_i32_0 : i32, i32
  }
  func.func @transform_22(%arg0: i32, %arg1: i32) -> (i32, i32) {
    %c0_i32 = arith.constant 0 : i32
    %c0_i32_0 = arith.constant 0 : i32
    %c0_i32_1 = arith.constant 0 : i32
    return %c0_i32, %c0_i32_0 : i32, i32
  }
  func.func @transform_23(%arg0: i32, %arg1: i32) -> (i32, i32) {
    %c0_i32 = arith.constant 0 : i32
    %c0_i32_0 = arith.constant 0 : i32
    %c0_i32_1 = arith.constant 0 : i32
    return %c0_i32, %c0_i32_0 : i32, i32
  }
  func.func @transform_24(%arg0: i32, %arg1: i32) -> (i32, i32) {
    %c0_i32 = arith.constant 0 : i32
    %c0_i32_0 = arith.constant 0 : i32
    %c0_i32_1 = arith.constant 0 : i32
    return %c0_i32, %c0_i32_0 : i32, i32
  }
  func.func @transform_25(%arg0: i32, %arg1: i32) -> (i32, i32) {
    %c0_i32 = arith.constant 0 : i32
    %c0_i32_0 = arith.constant 0 : i32
    %c0_i32_1 = arith.constant 0 : i32
    return %c0_i32, %c0_i32_0 : i32, i32
  }
  func.func @transform_26(%arg0: i32, %arg1: i32) -> (i32, i32) {
    %c0_i32 = arith.constant 0 : i32
    %c0_i32_0 = arith.constant 0 : i32
    %c0_i32_1 = arith.constant 0 : i32
    return %c0_i32, %c0_i32_0 : i32, i32
  }
  func.func @transform_27(%arg0: i32, %arg1: i32) -> (i32, i32) {
    %c0_i32 = arith.constant 0 : i32
    %c0_i32_0 = arith.constant 0 : i32
    %c0_i32_1 = arith.constant 0 : i32
    return %c0_i32, %c0_i32_0 : i32, i32
  }
  func.func @transform_28(%arg0: i32, %arg1: i32) -> (i32, i32) {
    %c0_i32 = arith.constant 0 : i32
    %c0_i32_0 = arith.constant 0 : i32
    %c0_i32_1 = arith.constant 0 : i32
    return %c0_i32, %c0_i32_0 : i32, i32
  }
  func.func @transform_29(%arg0: i32, %arg1: i32) -> (i32, i32) {
    %c0_i32 = arith.constant 0 : i32
    %c0_i32_0 = arith.constant 0 : i32
    %c0_i32_1 = arith.constant 0 : i32
    return %c0_i32, %c0_i32_0 : i32, i32
  }
  func.func @transform_30(%arg0: i32, %arg1: i32) -> (i32, i32, i32) {
    %c0_i32 = arith.constant 0 : i32
    %c0_i32_0 = arith.constant 0 : i32
    return %arg0, %arg1, %c0_i32 : i32, i32, i32
  }
}

</mosaic_0001>

<bundles_post_ra>
// kernel: tpu_custom_call.1
= control target key start
LH: loop header
LB: loop body
LE: loop exit
PB: predicated region body
PF: predicated region fallthrough
CT: control target
= control target key end

     0   :  { %s5634_s6 = smov 1   ;;  %s5635_s10 = smov 2   ;;  %s6554_s0 = inlined_call_operand.smem [shape: u32[31], index: -1, kind: input, shape index: {}] }
   0x1   :  { %s5702_s5 = sld [smem:[%s6554_s0]]   ;;  %s5636_s14 = smov 3  }
   0x2   :  { %s5707_s9 = sld [smem:[%s6554_s0 + %s5634_s6]]   ;;  %s5637_s18 = smov 4  }
   0x3   :  { %s5712_s13 = sld [smem:[%s6554_s0 + %s5635_s10]]   ;;  %s5638_s22 = smov 5  }
   0x4   :  { %s5717_s17 = sld [smem:[%s6554_s0 + %s5636_s14]]   ;;  %s5639_s26 = smov 6  }
   0x5   :  { %s5722_s21 = sld [smem:[%s6554_s0 + %s5637_s18]]   ;;  %s5640_s30 = smov 7  }
   0x6   :  { %s5727_s25 = sld [smem:[%s6554_s0 + %s5638_s22]]   ;;  %s5641_s4 = smov 8  }
   0x7   :  { %6571 = sst [smem:[#allocation40_spill]] %s5702_s5  ;;  %s5642_s10 = smov 9  }
   0x8   :  { %6572 = sst [smem:[#allocation41_spill]] %s5707_s9  ;;  %s5643_s15 = smov 10  }
   0x9   :  { %6573 = sst [smem:[#allocation42_spill]] %s5712_s13  ;;  %s5644_s20 = smov 11  }
   0xa   :  { %6574 = sst [smem:[#allocation43_spill]] %s5717_s17  ;;  %s5646_s1 = smov 13  }
   0xb   :  { %6575 = sst [smem:[#allocation44_spill]] %s5722_s21  ;;  %s5647_s7 = smov 14  }
   0xc   :  { %s5732_s29 = sld [smem:[%s6554_s0 + %s5639_s26]]   ;;  %s5645_s26 = smov 12  }
   0xd   :  { %s5737_s3 = sld [smem:[%s6554_s0 + %s5640_s30]]   ;;  %s5649_s22 = smov 16  }
   0xe   :  { %s5742_s8 = sld [smem:[%s6554_s0 + %s5641_s4]]   ;;  %s5650_s28 = smov 17  }
   0xf   :  { %s5747_s14 = sld [smem:[%s6554_s0 + %s5642_s10]]  }
  0x10   :  { %s5752_s19 = sld [smem:[%s6554_s0 + %s5643_s15]]   ;;  %s5648_s15 = smov 15  }
  0x11   :  { %s5757_s24 = sld [smem:[%s6554_s0 + %s5644_s20]]  }
  0x12   :  { %6576 = sst [smem:[#allocation45_spill]] %s5732_s29 }
  0x13   :  { %6577 = sst [smem:[#allocation46_spill]] %s5737_s3 }
  0x14   :  { %6578 = sst [smem:[#allocation47_spill]] %s5742_s8 }
  0x15   :  { %s5762_s30 = sld [smem:[%s6554_s0 + %s5645_s26]]  }
  0x16   :  { %6579 = sst [smem:[#allocation48_spill]] %s5752_s19 }
  0x17   :  { %s5767_s6 = sld [smem:[%s6554_s0 + %s5646_s1]]  }
  0x18   :  { %s5772_s12 = sld [smem:[%s6554_s0 + %s5647_s7]]   ;;  %s5651_s7 = smov 18  }
  0x19   :  { %s5777_s20 = sld [smem:[%s6554_s0 + %s5648_s15]]   ;;  %s5652_s15 = smov 19  }
  0x1a   :  { %s5782_s27 = sld [smem:[%s6554_s0 + %s5649_s22]]   ;;  %s5653_s22 = smov 20  }
  0x1b   :  { %s5787_s4 = sld [smem:[%s6554_s0 + %s5650_s28]]   ;;  %s5654_s28 = smov 21  }
  0x1c   :  { %s5792_s13 = sld [smem:[%s6554_s0 + %s5651_s7]]   ;;  %s5655_s7 = smov 22  }
  0x1d   :  { %6580 = sst [smem:[#allocation49_spill]] %s5767_s6 }
  0x1e   :  { %s5797_s19 = sld [smem:[%s6554_s0 + %s5652_s15]]   ;;  %s5656_s15 = smov 23  }
  0x1f   :  { %s5802_s5 = sld [smem:[%s6554_s0 + %s5653_s22]]   ;;  %s5657_s22 = smov 24  }
  0x20   :  { %s5807_s9 = sld [smem:[%s6554_s0 + %s5654_s28]]   ;;  %s5658_s28 = smov 25  }
  0x21   :  { %6581 = sst [smem:[#allocation50_spill]] %s5787_s4 }
  0x22   :  { %6582 = sst [smem:[#allocation51_spill]] %s5792_s13 }
  0x23   :  { %s5812_s17 = sld [smem:[%s6554_s0 + %s5655_s7]]   ;;  %s5659_s7 = smov 26  }
  0x24   :  { %6583 = sst [smem:[#allocation52_spill]] %s5797_s19 }
  0x25   :  { %6584 = sst [smem:[#allocation53_spill]] %s5802_s5 }
  0x26   :  { %6585 = sst [smem:[#allocation54_spill]] %s5807_s9 }
  0x27   :  { %s5817_s19 = sld [smem:[%s6554_s0 + %s5656_s15]]   ;;  %s5660_s15 = smov 27  }
  0x28   :  { %s5822_s13 = sld [smem:[%s6554_s0 + %s5657_s22]]   ;;  %s5661_s22 = smov 28  }
  0x29   :  { %6586 = sst [smem:[#allocation55_spill]] %s5812_s17 }
  0x2a   :  { %s5827_s9 = sld [smem:[%s6554_s0 + %s5658_s28]]   ;;  %s5662_s28 = smov 29  }
  0x2b   :  { %s5832_s17 = sld [smem:[%s6554_s0 + %s5659_s7]]   ;;  %s5663_s7 = smov 30  }
  0x2d   :  { %6587 = sst [smem:[#allocation56_spill]] %s5817_s19 }
  0x2e   :  { %6588 = sst [smem:[#allocation57_spill]] %s5822_s13 }
  0x2f   :  { %s5837_s19 = sld [smem:[%s6554_s0 + %s5660_s15]]  }
  0x30   :  { %6589 = sst [smem:[#allocation58_spill]] %s5827_s9 }
  0x31   :  { %6590 = sst [smem:[#allocation59_spill]] %s5832_s17 }
  0x32   :  { %s5842_s13 = sld [smem:[%s6554_s0 + %s5661_s22]]  }
  0x33   :  { %s5847_s9 = sld [smem:[%s6554_s0 + %s5662_s28]]  }
  0x34   :  { %s5852_s17 = sld [smem:[%s6554_s0 + %s5663_s7]]  }
  0x35   :  { %6591 = sst [smem:[#allocation60_spill]] %s5837_s19 }
  0x38   :  { %6592 = sst [smem:[#allocation61_spill]] %s5842_s13 }
  0x39   :  { %6593 = sst [smem:[#allocation62_spill]] %s5847_s9 }
  0x3a   :  { %6594 = sst [smem:[#allocation63_spill]] %s5852_s17 }
  0x3b   :  { %66 = vsyncpa [#allocation3], 0 }
  0x3c   :  { %68 = vsyncpa [#allocation3 + $0x1], 0 }
  0x3d   :  { %69 = vsyncpa [#allocation6], 0 }
  0x3e   :  { %70 = vsyncpa [#allocation9], 0 }
  0x3f   :  { %71 = vsyncpa [#allocation12], 0 }
  0x40   :  { %72 = vsyncpa [#allocation15], 0 }
  0x41   :  { %73 = vsyncpa [#allocation18], 0 }
  0x42   :  { %74 = vsyncpa [#allocation21], 0 }
  0x43   :  { %75 = vsyncpa [#allocation24], 0 }
  0x44   :  { %76 = vsyncpa [#allocation27], 0 }
  0x45   :  { %77 = vsyncpa [#allocation4], 0 }
  0x46   :  { %79 = vsyncpa [#allocation4 + $0x1], 0  ;;  %s5854_s15 = smov 0   ;;  %s5856_s16 = smov 0  }
  0x47   :  { %s5858_s18 = smov 0   ;;  %s5860_s0 = smov 0  }
  0x48   :  { %s5862_s22 = smov 0   ;;  %s5864_s23 = smov 0  }
  0x49 LB: > { %s6558_s26 = sadd.s32 4294967295, %s5632_s23   ;;  %p4381_p0 = scmp.ge.s32.totalorder %s5632_s23, 1  ;;  %s5632_s23 = sphi %s5864_s23, %s85_s23   ;;  %s5628_s22 = sphi %s5862_s22, %s6643_s22   ;;  %s5624_s0 = sphi %s5860_s0, %s6642_s0   ;;  %s5620_s18 = sphi %s5858_s18, %s6641_s18   ;;  %s5616_s16 = sphi %s5856_s16, %s6640_s16   ;;  %s5612_s15 = sphi %s5854_s15, %s6639_s15  }
  0x4a   : > { %p5888_p1 = scmp.eq.s32.totalorder %s6558_s26, 0  ;;  %p784_p2 = scmp.lt.s32.totalorder %s5632_s23, 3 }
  0x4b   : > { %s5664_s2 = smov [#allocation5]   ;;  %s5665_s11 = smov [#allocation8]  }
  0x4c   : > { %s6595_s28 = scalar_select %p5888_p1, 1, 0 }
  0x4d   : > { %p5893_p3 = pnand %p4381_p0, %p784_p2  ;;  %s796_s7 = sshll.u32 %s5664_s2, 4  ;;  %s797_s7 = int_to_ptr.vmem [resolvable:$true] %s796_s7 }
  0x4e   : > { %s820_s26 = sshll.u32 %s5665_s11, 4  ;;  %s5666_s17 = smov [#allocation11]   ;;  %s821_s26 = int_to_ptr.vmem [resolvable:$true] %s820_s26 }
  0x4f   : > { %s6596_s1 = scalar_select %p5893_p3, 1, 0 }
  0x50   : > { %p4819_p4 = pneg %p5893_p3  ;;  %s844_s9 = sshll.u32 %s5666_s17, 4  ;;  %s845_s9 = int_to_ptr.vmem [resolvable:$true] %s844_s9 }
  0x51   : > { %s5087_s2 = scalar_lea.vmem %s797_s7, 256  ;;  %p5095_p11 = scmp.lt.s32.totalorder %s797_s7, %s797_s7 }
  0x52   : > { %p5902_p6 = pnand %p4819_p4, %p5888_p1  ;;  %p5088_p8 = scmp.ne.s32.totalorder %s797_s7, %s5087_s2 }
  0x53   : > { %p5096_p12 = scmp.lt.s32.totalorder %s5087_s2, %s5087_s2 }
  0x54   : > { %p5908_p7 = pneg %p5902_p6 }
  0x55   : > { %p5097_p13 = por %p5096_p12, %p5095_p11 }
  0x56   : > { %p5090_p9 = pnand %p5088_p8, %p5908_p7 }
  0x58   : > { %p5091_p10 = pneg %p5090_p9 }
  0x5a   : > { %p5098_p0 = pnand %p5097_p13, %p5091_p10 }
  0x5c   : > { %5101 = shalt.err (!%p5098_p0)
}
  0x5d   : > { %s6563_s11 = smov 64   ;;  %s6599_s21 = sld [smem:[#allocation44_spill]] }
  0x5e   : > { %s6565_s17 = smov 4   ;;  %s5113_s19 = scalar_lea.vmem %s821_s26, 256 }
  0x5f   : > { %p5114_p2 = scmp.ne.s32.totalorder %s821_s26, %s5113_s19  ;;  %p5121_p9 = scmp.lt.s32.totalorder %s821_s26, %s821_s26 }
  0x60   : > { %p5122_p5 = scmp.lt.s32.totalorder %s5113_s19, %s5113_s19 }
  0x61   : > { %p5116_p4 = pnand %p5114_p2, %p5908_p7 }
  0x62   : > { %p5123_p11 = por %p5122_p5, %p5121_p9 }
  0x63   : > { %4822 = dma.hbm_to_vmem [thread:$0]  (!%p5902_p6), %s6599_s21, 256, %s797_s7, [#allocation6], %s6563_s11, %s6563_s11, %s6565_s17  }
  0x64   : > { %p5117_p8 = pneg %p5116_p4 }
  0x66   : > { %p5124_p10 = pnand %p5123_p11, %p5117_p8 }
  0x68   : > { %5127 = shalt.err (!%p5124_p10)
}
  0x69   : > { %s6600_s29 = sld [smem:[#allocation45_spill]]  ;;  %s5139_s7 = scalar_lea.vmem %s845_s9, 256 }
  0x6a   : > { %p5140_p12 = scmp.ne.s32.totalorder %s845_s9, %s5139_s7  ;;  %p5147_p2 = scmp.lt.s32.totalorder %s845_s9, %s845_s9 }
  0x6b   : > { %p5148_p4 = scmp.lt.s32.totalorder %s5139_s7, %s5139_s7 }
  0x6c   : > { %p5142_p13 = pnand %p5140_p12, %p5908_p7 }
  0x6d   : > { %p5149_p3 = por %p5148_p4, %p5147_p2 }
  0x6e   : > { %p5143_p0 = pneg %p5142_p13 }
  0x6f   : > { %4828 = dma.hbm_to_vmem [thread:$0]  (!%p5902_p6), %s6600_s29, 256, %s821_s26, [#allocation9], %s6563_s11, %s6563_s11, %s6565_s17  }
  0x70   : > { %p5150_p5 = pnand %p5149_p3, %p5143_p0 }
  0x72   : > { %5153 = shalt.err (!%p5150_p5)
}
  0x73   : > { %s6601_s8 = sld [smem:[#allocation47_spill]]  ;;  %s5669_s19 = smov [#allocation14]  }
  0x74   : > { %s872_s26 = sshll.u32 %s5669_s19, 4  ;;  %s5670_s2 = smov [#allocation17]   ;;  %s873_s26 = int_to_ptr.vmem [resolvable:$true] %s872_s26 }
  0x75   : > { %s894_s21 = sshll.u32 %s5670_s2, 4  ;;  %s5165_s29 = scalar_lea.vmem %s873_s26, 16  ;;  %s895_s21 = int_to_ptr.vmem [resolvable:$true] %s894_s21 }
  0x76   : > { %p5166_p8 = scmp.ne.s32.totalorder %s873_s26, %s5165_s29  ;;  %s5172_s7 = scalar_lea.vmem %s873_s26, 32 }
  0x77   : > { %p5173_p3 = scmp.lt.s32.totalorder %s873_s26, %s873_s26  ;;  %p5174_p10 = scmp.lt.s32.totalorder %s5172_s7, %s5165_s29 }
  0x78   : > { %p5168_p9 = pnand %p5166_p8, %p5908_p7 }
  0x79   : > { %4834 = dma.hbm_to_vmem [thread:$0]  (!%p5902_p6), %s6601_s8, 256, %s845_s9, [#allocation12], %s6563_s11, %s6563_s11, %s6565_s17  }
  0x7a   : > { %p5169_p11 = pneg %p5168_p9  ;;  %p5175_p12 = por %p5174_p10, %p5173_p3 }
  0x7c   : > { %p5176_p13 = pnand %p5175_p12, %p5169_p11 }
  0x7e   : > { %5179 = shalt.err (!%p5176_p13)
}
  0x7f   : > { %4840 = dma.hbm_to_vmem [thread:$0]  (!%p5902_p6), %s5757_s24, 16, %s873_s26, [#allocation15]  }
  0x80   : > { %s5191_s9 = scalar_lea.vmem %s895_s21, 16  ;;  %s5198_s19 = scalar_lea.vmem %s895_s21, 32 }
  0x81   : > { %p5192_p0 = scmp.ne.s32.totalorder %s895_s21, %s5191_s9  ;;  %p5199_p5 = scmp.lt.s32.totalorder %s895_s21, %s895_s21 }
  0x82   : > { %p5200_p8 = scmp.lt.s32.totalorder %s5198_s19, %s5191_s9 }
  0x83   : > { %p5194_p2 = pnand %p5192_p0, %p5908_p7 }
  0x84   : > { %p5201_p9 = por %p5200_p8, %p5199_p5 }
  0x85   : > { %p5195_p4 = pneg %p5194_p2 }
  0x87   : > { %p5202_p1 = pnand %p5201_p9, %p5195_p4 }
  0x89   : > { %5205 = shalt.err (!%p5202_p1)
}
  0x8a   : > { %s6602_s6 = sld [smem:[#allocation49_spill]]  ;;  %s5671_s29 = smov [#allocation20]  }
  0x8b   : > { %s918_s2 = sshll.u32 %s5671_s29, 4  ;;  %s5672_s26 = smov [#allocation23]   ;;  %s919_s2 = int_to_ptr.vmem [resolvable:$true] %s918_s2 }
  0x8c   : > { %s942_s7 = sshll.u32 %s5672_s26, 4  ;;  %s5217_s11 = scalar_lea.vmem %s919_s2, 16  ;;  %s943_s7 = int_to_ptr.vmem [resolvable:$true] %s942_s7 }
  0x8d   : > { %p5218_p11 = scmp.ne.s32.totalorder %s919_s2, %s5217_s11  ;;  %s5224_s17 = scalar_lea.vmem %s919_s2, 32 }
  0x8e   : > { %p5225_p12 = scmp.lt.s32.totalorder %s919_s2, %s919_s2  ;;  %p5226_p13 = scmp.lt.s32.totalorder %s5224_s17, %s5217_s11 }
  0x8f   : > { %p5220_p3 = pnand %p5218_p11, %p5908_p7 }
  0x90   : > { %4846 = dma.hbm_to_vmem [thread:$0]  (!%p5902_p6), %s6602_s6, 16, %s895_s21, [#allocation18]  }
  0x91   : > { %p5221_p10 = pneg %p5220_p3  ;;  %p5227_p0 = por %p5226_p13, %p5225_p12 }
  0x93   : > { %p5228_p1 = pnand %p5227_p0, %p5221_p10 }
  0x95   : > { %5231 = shalt.err (!%p5228_p1)
}
  0x96   : > { %4852 = dma.hbm_to_vmem [thread:$0]  (!%p5902_p6), %s5777_s20, 16, %s919_s2, [#allocation21]  }
  0x97   : > { %s5243_s21 = scalar_lea.vmem %s943_s7, 16  ;;  %s5250_s9 = scalar_lea.vmem %s943_s7, 32 }
  0x98   : > { %p5244_p2 = scmp.ne.s32.totalorder %s943_s7, %s5243_s21  ;;  %p5251_p8 = scmp.lt.s32.totalorder %s943_s7, %s943_s7 }
  0x99   : > { %p5252_p9 = scmp.lt.s32.totalorder %s5250_s9, %s5243_s21 }
  0x9a   : > { %p5246_p4 = pnand %p5244_p2, %p5908_p7 }
  0x9b   : > { %p5253_p11 = por %p5252_p9, %p5251_p8 }
  0x9c   : > { %p5247_p5 = pneg %p5246_p4 }
  0x9e   : > { %p5254_p3 = pnand %p5253_p11, %p5247_p5 }
  0xa0   : > { %5257 = shalt.err (!%p5254_p3)
}
  0xa1   : > { %s6603_s4 = sld [smem:[#allocation50_spill]]  ;;  %s5673_s11 = smov [#allocation26]  }
  0xa2   : > { %s968_s17 = sshll.u32 %s5673_s11, 4  ;;  %s5674_s19 = smov [#allocation7]   ;;  %s969_s17 = int_to_ptr.vmem [resolvable:$true] %s968_s17 }
  0xa3   : > { %s810_s29 = sshll.u32 %s5674_s19, 4  ;;  %s5269_s2 = scalar_lea.vmem %s969_s17, 256  ;;  %s811_s29 = int_to_ptr.vmem [resolvable:$true] %s810_s29 }
  0xa4   : > { %p5270_p10 = scmp.ne.s32.totalorder %s969_s17, %s5269_s2  ;;  %p5277_p0 = scmp.lt.s32.totalorder %s969_s17, %s969_s17 }
  0xa5   : > { %p5278_p1 = scmp.lt.s32.totalorder %s5269_s2, %s5269_s2 }
  0xa6   : > { %p5272_p12 = pnand %p5270_p10, %p5908_p7 }
  0xa7   : > { %4858 = dma.hbm_to_vmem [thread:$0]  (!%p5902_p6), %s6603_s4, 16, %s943_s7, [#allocation24]  }
  0xa8   : > { %p5273_p13 = pneg %p5272_p12  ;;  %p5279_p2 = por %p5278_p1, %p5277_p0 }
  0xaa   : > { %p5280_p4 = pnand %p5279_p2, %p5273_p13 }
  0xac   : > { %5283 = shalt.err (!%p5280_p4)
}
  0xad   : > { %s6604_s26 = smov 4   ;;  %s6605_s21 = smov 64  }
  0xae   : > { %s6606_s5 = sld [smem:[#allocation53_spill]]  ;;  %s5295_s7 = scalar_lea.vmem %s811_s29, 16 }
  0xaf   : > { %p5296_p5 = scmp.ne.s32.totalorder %s811_s29, %s5295_s7  ;;  %s5302_s9 = scalar_lea.vmem %s811_s29, 32 }
  0xb0   : > { %p5303_p11 = scmp.lt.s32.totalorder %s811_s29, %s811_s29  ;;  %p5304_p3 = scmp.lt.s32.totalorder %s5302_s9, %s5295_s7 }
  0xb1   : > { %p5298_p8 = pnand %p5296_p5, %p5908_p7 }
  0xb2   : > { %p5305_p10 = por %p5304_p3, %p5303_p11 }
  0xb3   : > { %p5299_p9 = pneg %p5298_p8 }
  0xb4   : > { %4864 = dma.hbm_to_vmem [thread:$0]  (!%p5902_p6), %s6606_s5, 256, %s969_s17, [#allocation27], %s6605_s21, %s6605_s21, %s6604_s26  }
  0xb5   : > { %p5306_p12 = pnand %p5305_p10, %p5299_p9 }
  0xb7   : > { %5309 = shalt.err (!%p5306_p12)
}
  0xb8   : > { %4825 = dma.hbm_to_vmem [thread:$0]  (!%p5902_p6), %s5727_s25, 16, %s811_s29, [#allocation6]  }
  0xb9   : > { %s5675_s11 = smov [#allocation10]   ;;  %s5676_s17 = smov [#allocation13]  }
  0xba   : > { %s834_s19 = sshll.u32 %s5675_s11, 4  ;;  %s858_s2 = sshll.u32 %s5676_s17, 4  ;;  %s835_s19 = int_to_ptr.vmem [resolvable:$true] %s834_s19  ;;  %s859_s2 = int_to_ptr.vmem [resolvable:$true] %s858_s2 }
  0xbb   : > { %s5321_s4 = scalar_lea.vmem %s835_s19, 16  ;;  %s5328_s5 = scalar_lea.vmem %s835_s19, 32 }
  0xbc   : > { %p5322_p13 = scmp.ne.s32.totalorder %s835_s19, %s5321_s4  ;;  %p5329_p2 = scmp.lt.s32.totalorder %s835_s19, %s835_s19 }
  0xbd   : > { %p5330_p4 = scmp.lt.s32.totalorder %s5328_s5, %s5321_s4 }
  0xbe   : > { %p5324_p0 = pnand %p5322_p13, %p5908_p7 }
  0xbf   : > { %p5331_p5 = por %p5330_p4, %p5329_p2 }
  0xc0   : > { %p5325_p1 = pneg %p5324_p0 }
  0xc2   : > { %p5332_p8 = pnand %p5331_p5, %p5325_p1 }
  0xc4   : > { %5335 = shalt.err (!%p5332_p8)
}
  0xc5   : > { %s6607_s3 = sld [smem:[#allocation46_spill]]  ;;  %s5347_s29 = scalar_lea.vmem %s859_s2, 16 }
  0xc6   : > { %p5348_p9 = scmp.ne.s32.totalorder %s859_s2, %s5347_s29  ;;  %s5354_s7 = scalar_lea.vmem %s859_s2, 32 }
  0xc7   : > { %p5355_p10 = scmp.lt.s32.totalorder %s859_s2, %s859_s2  ;;  %p5356_p12 = scmp.lt.s32.totalorder %s5354_s7, %s5347_s29 }
  0xc8   : > { %p5350_p11 = pnand %p5348_p9, %p5908_p7 }
  0xc9   : > { %p5357_p13 = por %p5356_p12, %p5355_p10 }
  0xca   : > { %p5351_p3 = pneg %p5350_p11 }
  0xcb   : > { %4831 = dma.hbm_to_vmem [thread:$0]  (!%p5902_p6), %s6607_s3, 16, %s835_s19, [#allocation9]  }
  0xcc   : > { %p5358_p0 = pnand %p5357_p13, %p5351_p3 }
  0xce   : > { %5361 = shalt.err (!%p5358_p0)
}
  0xcf   : > { %4837 = dma.hbm_to_vmem [thread:$0]  (!%p5902_p6), %s5747_s14, 16, %s859_s2, [#allocation12]  }
  0xd0   : > { %s5677_s5 = smov [#allocation16]   ;;  %s5678_s9 = smov [#allocation19]  }
  0xd1   : > { %s883_s4 = sshll.u32 %s5677_s5, 4  ;;  %s904_s11 = sshll.u32 %s5678_s9, 4  ;;  %s884_s4 = int_to_ptr.vmem [resolvable:$true] %s883_s4  ;;  %s905_s11 = int_to_ptr.vmem [resolvable:$true] %s904_s11 }
  0xd2   : > { %s5373_s19 = scalar_lea.vmem %s884_s4, 16  ;;  %s5380_s17 = scalar_lea.vmem %s884_s4, 32 }
  0xd3   : > { %p5374_p1 = scmp.ne.s32.totalorder %s884_s4, %s5373_s19  ;;  %p5381_p5 = scmp.lt.s32.totalorder %s884_s4, %s884_s4 }
  0xd4   : > { %p5382_p8 = scmp.lt.s32.totalorder %s5380_s17, %s5373_s19 }
  0xd5   : > { %p5376_p2 = pnand %p5374_p1, %p5908_p7 }
  0xd6   : > { %p5383_p9 = por %p5382_p8, %p5381_p5 }
  0xd7   : > { %p5377_p4 = pneg %p5376_p2 }
  0xd9   : > { %p5384_p11 = pnand %p5383_p9, %p5377_p4 }
  0xdb   : > { %5387 = shalt.err (!%p5384_p11)
}
  0xdc   : > { %4843 = dma.hbm_to_vmem [thread:$0]  (!%p5902_p6), %s5762_s30, 16, %s884_s4, [#allocation15]  }
  0xdd   : > { %s5399_s2 = scalar_lea.vmem %s905_s11, 256  ;;  %p5407_p13 = scmp.lt.s32.totalorder %s905_s11, %s905_s11 }
  0xde   : > { %p5400_p3 = scmp.ne.s32.totalorder %s905_s11, %s5399_s2  ;;  %p5408_p0 = scmp.lt.s32.totalorder %s5399_s2, %s5399_s2 }
  0xe0   : > { %p5402_p10 = pnand %p5400_p3, %p5908_p7  ;;  %p5409_p1 = por %p5408_p0, %p5407_p13 }
  0xe2   : > { %p5403_p12 = pneg %p5402_p10 }
  0xe4   : > { %p5410_p2 = pnand %p5409_p1, %p5403_p12 }
  0xe6   : > { %5413 = shalt.err (!%p5410_p2)
}
  0xe7   : > { %4849 = dma.hbm_to_vmem [thread:$0]  (!%p5902_p6), %s5772_s12, 256, %s905_s11, [#allocation18], %s6605_s21, %s6605_s21, %s6604_s26  }
  0xe8   : > { %s5679_s29 = smov [#allocation22]   ;;  %s5680_s5 = smov [#allocation25]  }
  0xe9   : > { %s928_s7 = sshll.u32 %s5679_s29, 4  ;;  %s952_s4 = sshll.u32 %s5680_s5, 4  ;;  %s929_s7 = int_to_ptr.vmem [resolvable:$true] %s928_s7  ;;  %s953_s4 = int_to_ptr.vmem [resolvable:$true] %s952_s4 }
  0xea   : > { %s5425_s9 = scalar_lea.vmem %s929_s7, 256  ;;  %p5433_p9 = scmp.lt.s32.totalorder %s929_s7, %s929_s7 }
  0xeb   : > { %p5426_p4 = scmp.ne.s32.totalorder %s929_s7, %s5425_s9  ;;  %p5434_p11 = scmp.lt.s32.totalorder %s5425_s9, %s5425_s9 }
  0xed   : > { %p5428_p5 = pnand %p5426_p4, %p5908_p7  ;;  %p5435_p3 = por %p5434_p11, %p5433_p9 }
  0xef   : > { %p5429_p8 = pneg %p5428_p5 }
  0xf1   : > { %p5436_p10 = pnand %p5435_p3, %p5429_p8 }
  0xf3   : > { %5439 = shalt.err (!%p5436_p10)
}
  0xf4   : > { %4855 = dma.hbm_to_vmem [thread:$0]  (!%p5902_p6), %s5782_s27, 256, %s929_s7, [#allocation21], %s6605_s21, %s6605_s21, %s6604_s26  }
  0xf5   : > { %s5451_s11 = scalar_lea.vmem %s953_s4, 256  ;;  %p5459_p1 = scmp.lt.s32.totalorder %s953_s4, %s953_s4 }
  0xf6   : > { %p5452_p12 = scmp.ne.s32.totalorder %s953_s4, %s5451_s11  ;;  %p5460_p2 = scmp.lt.s32.totalorder %s5451_s11, %s5451_s11 }
  0xf8   : > { %p5454_p13 = pnand %p5452_p12, %p5908_p7  ;;  %p5461_p4 = por %p5460_p2, %p5459_p1 }
  0xfa   : > { %p5455_p0 = pneg %p5454_p13 }
  0xfc   : > { %p5462_p5 = pnand %p5461_p4, %p5455_p0 }
  0xfe   : > { %5465 = shalt.err (!%p5462_p5)
}
  0xff   : > { %s6608_s19 = sld [smem:[#allocation51_spill]]  ;;  %s5681_s17 = smov [#allocation28]  }
 0x100   : > { %s990_s2 = sshll.u32 %s5681_s17, 4  ;;  %s991_s2 = int_to_ptr.vmem [resolvable:$true] %s990_s2 }
 0x101   : > { %s5477_s29 = scalar_lea.vmem %s991_s2, 256  ;;  %p5485_p3 = scmp.lt.s32.totalorder %s991_s2, %s991_s2 }
 0x102   : > { %p5478_p8 = scmp.ne.s32.totalorder %s991_s2, %s5477_s29  ;;  %p5486_p10 = scmp.lt.s32.totalorder %s5477_s29, %s5477_s29 }
 0x104   : > { %p5480_p9 = pnand %p5478_p8, %p5908_p7  ;;  %p5487_p12 = por %p5486_p10, %p5485_p3 }
 0x105   : > { %4861 = dma.hbm_to_vmem [thread:$0]  (!%p5902_p6), %s6608_s19, 256, %s953_s4, [#allocation24], %s6605_s21, %s6605_s21, %s6604_s26  }
 0x106   : > { %p5481_p11 = pneg %p5480_p9 }
 0x108   : > { %p5488_p13 = pnand %p5487_p12, %p5481_p11 }
 0x10a   : > { %5491 = shalt.err (!%p5488_p13)
}
 0x10b   : > { %s6609_s7 = sld [smem:[#allocation57_spill]]  ;;  %s4380_s13 = sadd.s32 4294967294, %s5632_s23  }
 0x10c   : > { %s97_s5 = sadd.s32 1, %s5628_s22  ;;  %s186_s10 = sadd.s32 1, %s5620_s18 }
 0x10d   : > { %p99_p7 = scmp.ge.s32.totalorder %s97_s5, 2  ;;  %p193_p0 = scmp.ne.s32.totalorder %s5620_s18, %s5616_s16 }
 0x10e   : > { %p194_p1 = scmp.eq.s32.totalorder %s5632_s23, 0  ;;  %s6610_s4 = sld [smem:[#allocation43_spill]] }
 0x10f   : > { %s6645_s5 = smov (%p99_p7, %s97_s5), 0  ;;  %p199_p4 = scmp.ne.s32.totalorder %s5616_s16, %s5612_s15 }
 0x110   : > { %p6024_p2 = por %p194_p1, %p193_p0  ;;  %p6613_p8 = scmp.ne.s32.totalorder %s6595_s28, 0 }
 0x111   : > { %4867 = dma.hbm_to_vmem [thread:$0]  (!%p5902_p6), %s6609_s7, 256, %s991_s2, [#allocation27], %s6605_s21, %s6605_s21, %s6604_s26  }
 0x112   : > { %s181_s26 = ssub.s32 %s5628_s22, %s6645_s5  ;;  %s6612_s21 = sadd.s32 4294967295, %s5632_s23  }
 0x113   : > { %p771_p6 = scmp.eq.s32.totalorder %s6612_s21, 1  ;;  %p184_p5 = scmp.eq.s32.totalorder %s181_s26, 0 }
 0x114   : > { %p6036_p9 = por %p6613_p8, %p199_p4  ;;  %p777_p3 = scmp.eq.s32.totalorder %s4380_s13, 1 }
 0x115   : > { %p6040_p11 = por %p771_p6, %p193_p0  ;;  %p4892_p12 = scmp.lt.s32.totalorder %s5632_s23, 2 }
 0x116   : > { %s6614_s11 = scalar_select %p6036_p9, 1, 0 }
 0x117   : > { %s6615_s19 = scalar_select %p6040_p11, 1, 0 }
 0x118   : > { %s6045_s17 = scalar_select %p184_p5, %s5620_s18, %s186_s10  }
 0x119   : > { %p6047_p10 = por %p777_p3, %p199_p4  ;;  %s1043_s29 = sand.u32 1, %s5620_s18  }
 0x11a   : > { %s4400_s7 = sshll.u32 %s5628_s22, 7  ;;  %s4399_s26 = sshll.u32 %s1043_s29, 3 }
 0x11b   : > { %s6616_s2 = scalar_select %p6047_p10, 1, 0 }
 0x11c   : > { %s6055_s21 = scalar_lea.hbm %s6610_s4, %s4400_s7  ;;  %s1047_s3 = scalar_lea.vmem [#allocation2], %s4399_s26 }
 0x11d   : > { %s1055_s6 = sshll.u32 %s1047_s3, 4  ;;  %p6059_p13 = pnand %p4892_p12, %p6024_p2  ;;  %s1056_s6 = int_to_ptr.vmem [resolvable:$true] %s1055_s6 }
 0x11e   : > { %s1044_s10 = scalar_lea.sflag [#allocation3], %s1043_s29  ;;  %s5492_s8 = scalar_lea.hbm %s6055_s21, 128 }
 0x11f   : > { %s6617_s13 = scalar_select %p6059_p13, 1, 0 }
 0x120   : > { %p5493_p7 = scmp.ne.s32.totalorder %s6055_s21, %s5492_s8  ;;  %p5494_p0 = pneg %p6059_p13 }
 0x121   : > { %s5497_s7 = scalar_lea.hbm %s6610_s4, 256  ;;  %p5498_p6 = scmp.lt.s32.totalorder %s6055_s21, %s6610_s4 }
 0x122   : > { %p5495_p1 = pnand %p5494_p0, %p5493_p7  ;;  %p5499_p5 = scmp.lt.s32.totalorder %s5497_s7, %s5492_s8 }
 0x124   : > { %p5496_p4 = pneg %p5495_p1  ;;  %p5500_p8 = por %p5499_p5, %p5498_p6 }
 0x126   : > { %p5501_p3 = pnand %p5500_p8, %p5496_p4 }
 0x128   : > { %5504 = shalt.err (!%p5501_p3)
}
 0x129   : > { %s5505_s3 = scalar_lea.vmem %s1056_s6, 128  ;;  %s5682_s9 = smov [#allocation2]  }
 0x12a   : > { %p5506_p2 = scmp.ne.s32.totalorder %s1056_s6, %s5505_s3  ;;  %s5510_s26 = sshll.u32 %s5682_s9, 4  ;;  %s5511_s26 = int_to_ptr.vmem [resolvable:$false] %s5510_s26 }
 0x12b   : > { %s5512_s29 = scalar_lea.vmem %s5511_s26, 256  ;;  %p5513_p11 = scmp.lt.s32.totalorder %s1056_s6, %s5511_s26 }
 0x12c   : > { %p5508_p12 = pnand %p5506_p2, %p5494_p0  ;;  %p5514_p9 = scmp.lt.s32.totalorder %s5512_s29, %s5505_s3 }
 0x12e   : > { %p5509_p10 = pneg %p5508_p12  ;;  %p5515_p13 = por %p5514_p9, %p5513_p11 }
 0x130   : > { %p5516_p7 = pnand %p5515_p13, %p5509_p10 }
 0x132   : > { %5519 = shalt.err (!%p5516_p7)
}
 0x133   : > { %p6618_p1 = scmp.ne.s32.totalorder %s6617_s13, 0  ;;  %p6619_p4 = scmp.ne.s32.totalorder %s6596_s1, 0 }
 0x134   : > { %s6076_s8 = sand.u32 (!%p6619_p4), 1, %s5616_s16   ;;  %p6620_p9 = scmp.ne.s32.totalorder (!%p6619_p4), %s6614_s11, 0 }
 0x135   : > { %4871 = dma.hbm_to_vmem [thread:$0]  (!%p6618_p1), %s6055_s21, 128, %s1056_s6, %s1044_s10  }
 0x136   : > { %1064 = sbr.rel (%p6619_p4) target bundleno = 4119 (0x1017), region = 140  ;;  %s4402_s7 = sshll.u32 (!%p6619_p4), %s6076_s8, 3 }
 0x137   : > { %s1067_s9 = scalar_lea.sflag (!%p6619_p4), [#allocation3], %s6076_s8  ;;  %s6082_s3 = scalar_lea.vmem (!%p6619_p4), [#allocation2], %s4402_s7 }
 0x13b   : > { %5571 = dma.done.wait (%p6620_p9), %s1067_s9, 128  }
 0x13c   : > { %5573 = vsyncadd (%p6620_p9), %s1067_s9, 4294967168  ;;  %p6621_p11 = scmp.ne.s32.totalorder %s6595_s28, 0 }
 0x13e   : > { %5575 = dma.done.wait (%p6621_p11), [#allocation6], 272  }
 0x13f   : > { %5577 = vsyncadd (%p6621_p11), [#allocation6], 4294967024 }
 0x140   : > { %5579 = dma.done.wait (%p6621_p11), [#allocation9], 272  }
 0x141   : > { %5581 = vsyncadd (%p6621_p11), [#allocation9], 4294967024 }
 0x142   : > { %5583 = dma.done.wait (%p6621_p11), [#allocation12], 272  }
 0x143   : > { %5585 = vsyncadd (%p6621_p11), [#allocation12], 4294967024 }
 0x144   : > { %5587 = dma.done.wait (%p6621_p11), [#allocation15], 32  }
 0x145   : > { %5589 = vsyncadd (%p6621_p11), [#allocation15], 4294967264 }
 0x146   : > { %5591 = dma.done.wait (%p6621_p11), [#allocation18], 272  }
 0x147   : > { %5593 = vsyncadd (%p6621_p11), [#allocation18], 4294967024 }
 0x148   : > { %5595 = dma.done.wait (%p6621_p11), [#allocation21], 272  }
 0x149   : > { %5597 = vsyncadd (%p6621_p11), [#allocation21], 4294967024 }
 0x14a   : > { %5599 = dma.done.wait (%p6621_p11), [#allocation24], 272  }
 0x14b   : > { %5601 = vsyncadd (%p6621_p11), [#allocation24], 4294967024 }
 0x14c   : > { %5603 = dma.done.wait (%p6621_p11), [#allocation27], 512  }
 0x14d   : > { %5605 = vsyncadd (%p6621_p11), [#allocation27], 4294966784  ;;  %s6622_s6 = sld [smem:[#allocation41_spill]]  ;;  %p1226_p10 = scmp.lt.s32.totalorder %s5624_s0, 1  ;;  %v5683_v0 = vmov 0.0   ;;  %vm5684_vm0 = vmmov 0   ;;  %v1460_v25 = vlaneseq }
 0x14e   : > { %s6623_s1 = sld [smem:[#allocation40_spill]]  ;;  %4579 = vmatprep.subr.bf16.mxu1 %v5683_v0  ;;  %4571 = vmatprep.subr.bf16.mxu0 %v5683_v0  ;;  %v5016_v1 = vld [vmem:[#allocation8 + $0x8] sm:$0xff]   ;;  %v5017_v2 = vld [vmem:[#allocation5 + $0x8] sm:$0xff]   ;;  %v5018_v3 = vld [vmem:[#allocation8] sm:$0xff]   ;;  %vm1272_vm1 = vcmask 261120   ;;  %s5685_s10 = smov 104  }
 0x14f   : > { %4583 = vmatprep.mubr.msk.bf16.mxu1 %vm5684_vm0, %v5683_v0  ;;  %s1227_s11 = scalar_select %p1226_p10, %s5624_s0, 1  ;;  %4575 = vmatprep.mubr.msk.bf16.mxu0 %vm5684_vm0, %v5683_v0  ;;  %v5019_v4 = vld [vmem:[#allocation5] sm:$0xff]   ;;  %v4423_v11 = vld [vmem:[#allocation7] ss:$0 sm:$0xff]  ;;  %v5688_v23 = vmov 1983009808  }
 0x150   : > { %4580 = vmatpush3.bf16.msra.mxu1 %v5016_v1  ;;  %4572 = vmatpush3.bf16.msra.mxu0 %v5017_v2  ;;  %v4427_v9 = vld [vmem:[#allocation10] ss:$0 sm:$0xff]  ;;  %v5020_v12 = vld [vmem:[#allocation11 + $0x8] sm:$0xff]   ;;  %s5686_s26 = smov 120   ;;  %v5021_v19 = vld [vmem:[#allocation11] sm:$0xff]   ;;  %s5687_s29 = smov 112   ;;  %v1458_v24 = vunpack.c.l.s4 %v5688_v23 }
 0x151   : > { %s6128_s28 = sshll.u32 %s1227_s11, 3  ;;  %4581 = vmatprep.subr.bf16.mxu1 %v5683_v0  ;;  %4573 = vmatprep.subr.bf16.mxu0 %v5683_v0  ;;  %v5689_v26 = vmov 1934713408   ;;  %v1461_v29 = vshrl.u32 %v1460_v25, 7  ;;  %vm1895_vm2 = vcmask 64512   ;;  %vm2131_vm3 = vcmask 1043456  }
 0x152   : > { %v1490_v27 = vunpack.c.l.s4 %v5689_v26  ;;  %v1459_v28 = vunpack.c.0.s8 %v1458_v24  ;;  %s6624_s9 = sld [smem:[#allocation48_spill]]  ;;  %s5692_s11 = smov 24   ;;  %vm2462_vm4 = vcmask 130048   ;;  %vm2464_vm5 = vcmask 195584  }
 0x153   : > { %s1236_s21 = scalar_lea.vmem %s6622_s6, %s6128_s28  ;;  %s5691_s6 = smov 8   ;;  %vm3986_vm6 = vcmask 523264  }
 0x154   : > { %s1232_s13 = scalar_lea.vmem %s6623_s1, %s6128_s28  ;;  %v1243_v5 = vld [vmem:[%s1236_s21] sm:$0xff]  ;;  %4582 = vmatpush3.bf16.msra.mxu1 %v5018_v3  ;;  %4574 = vmatpush3.bf16.msra.mxu0 %v5019_v4  ;;  %v1491_v32 = vunpack.c.0.s8 %v1490_v27  ;;  %v6159_v33 = vsub.s32 %v1459_v28, %v1461_v29  ;;  %s6625_s1 = sld [smem:[#allocation42_spill]] }
 0x155   : > { %v6136_v6 = vld [vmem:[%s1232_s13] sm:$0xff]  ;;  %v1247_v7 = vpack.c.bf16 %v1243_v5, %v1243_v5  ;;  %4595 = vmatprep.subr.bf16.mxu1 %v5683_v0  ;;  %4587 = vmatprep.subr.bf16.mxu0 %v5683_v0  ;;  %s6627_s13 = sld [smem:[#allocation54_spill]]  ;;  %p6636_p0 = scmp.ne.s32.totalorder %s6615_s19, 0 }
 0x156   : > { %v1246_v8 = vpack.c.bf16 %v6136_v6, %v6136_v6  ;;  %v6161_v40 = vsub.s32 %v1491_v32, %v1461_v29  ;;  %s5693_s4 = smov [#allocation29]  }
 0x157   : > { %4584 = vmatmul.mubr.msk.bf16.vlgmr.msra.gmra.mxu1 %vm1272_vm1, %v1247_v7 }
 0x158   : > { %4576 = vmatmul.mubr.msk.bf16.vlgmr.msra.gmra.mxu0 %vm1272_vm1, %v1246_v8  ;;  %4597 = vmatprep.mubr.msk.bf16.mxu1 %vm5684_vm0, %v5683_v0 }
 0x159   : > { %4591 = vmatprep.mubr.msk.bf16.mxu0 %vm5684_vm0, %v5683_v0  ;;  %4588 = vmatpush3.bf16.msra.mxu0 %v5020_v12 }
 0x15a   : > { %4589 = vmatprep.subr.bf16.mxu0 %v5683_v0  ;;  %s1240_s21 = scalar_lea.vmem %s6625_s1, %s6128_s28  ;;  %s6626_s28 = sld [smem:[#allocation52_spill]] }
 0x15b   : > { %s6633_s1 = sld [smem:[#allocation61_spill]] }
 0x15d   : > { %4590 = vmatpush3.bf16.msra.mxu0 %v5021_v19 }
 0x15e   : > { %4601 = vmatprep.subr.bf16.mxu0 %v5683_v0 }
 0x160   : > { %4592 = vmatmul.mubr.msk.bf16.vlgmr.msra.gmra.mxu0 %vm1272_vm1, %v1247_v7 }
 0x161   : > { %4603 = vmatprep.mubr.msk.bf16.mxu0 %vm5684_vm0, %v5683_v0 }
 0x217   : > { %v1376_v10 = vpop.f32.mrf.mxu1 }
 0x218   : > { %v1377_v13 = vadd.f32 %v4427_v9, %v1376_v10  ;;  %v1310_v14 = vpop.f32.mrf.mxu0 }
 0x219   : > { %v4585_v15 = vpop.f32.mrf.mxu1  ;;  %v1311_v16 = vadd.f32 %v4423_v11, %v1310_v14 }
 0x21a   : > { %1602 = vrot.lane.b32.xlu1 %v1377_v13, %s5685_s10  ;;  %1596 = vrot.lane.b32.xlu0 %v1377_v13, %s5686_s26  ;;  %v4577_v17 = vpop.f32.mrf.mxu0 }
 0x21b   : > { %v1379_v18 = vpop.f32.mrf.mxu1 }
 0x21c   : > { %v1313_v20 = vpop.f32.mrf.mxu0 }
 0x21d   : > { %v4586_v21 = vpop.f32.mrf.mxu1 }
 0x21e   : > { %1599 = vrot.lane.b32.xlu0 %v1377_v13, %s5687_s29  ;;  %1446 = vrot.lane.b32.xlu1 %v1311_v16, %s5686_s26  ;;  %v4578_v22 = vpop.f32.mrf.mxu0 }
 0x222   : > { %1449 = vrot.lane.b32.xlu0 %v1311_v16, %s5687_s29  ;;  %1452 = vrot.lane.b32.xlu1 %v1311_v16, %s5685_s10 }
 0x28c   : > { %v1603_v30 = vpop.permute.xlu1 %1602  ;;  %v1597_v31 = vpop.permute.xlu0 %1596 }
 0x28d   : > { %v1621_v34 = vcombine.low %v1597_v31, %v1603_v30  ;;  %v1622_v35 = vcombine.high %v1597_v31, %v1603_v30 }
 0x28f   : > { %v1629_v41 = vrot.slane %v1621_v34, %v6159_v33  ;;  %v1636_v42 = vrot.slane %v1622_v35, %v6159_v33 }
 0x290   : > { %v1600_v36 = vpop.permute.xlu0 %1599  ;;  %v1447_v37 = vpop.permute.xlu1 %1446 }
 0x291   : > { %v1605_v38 = vcombine.low %v1377_v13, %v1600_v36  ;;  %v1606_v39 = vcombine.high %v1377_v13, %v1600_v36 }
 0x293   : > { %v1613_v43 = vrot.slane %v1605_v38, %v6159_v33  ;;  %v1620_v44 = vrot.slane %v1606_v39, %v6159_v33 }
 0x294   : > { %v1450_v45 = vpop.permute.xlu0 %1449  ;;  %v1453_v46 = vpop.permute.xlu1 %1452 }
 0x295   : > { %v1637_v47 = vcombine.low %v1613_v43, %v1629_v41  ;;  %v1638_v48 = vcombine.high %v1613_v43, %v1629_v41  ;;  %v1653_v49 = vcombine.low %v1620_v44, %v1636_v42  ;;  %v1654_v50 = vcombine.high %v1620_v44, %v1636_v42 }
 0x296   : > { %v1455_v51 = vcombine.low %v1311_v16, %v1450_v45  ;;  %v1456_v52 = vcombine.high %v1311_v16, %v1450_v45  ;;  %v1471_v53 = vcombine.low %v1447_v37, %v1453_v46  ;;  %v1472_v54 = vcombine.high %v1447_v37, %v1453_v46 }
 0x297   : > { %v1645_v55 = vrot.slane %v1637_v47, %v6161_v40  ;;  %v1652_v56 = vrot.slane %v1638_v48, %v6161_v40  ;;  %v1661_v57 = vrot.slane %v1653_v49, %v6161_v40  ;;  %v1668_v58 = vrot.slane %v1654_v50, %v6161_v40 }
 0x298   : > { %v1463_v59 = vrot.slane %v1455_v51, %v6159_v33  ;;  %v1470_v60 = vrot.slane %v1456_v52, %v6159_v33  ;;  %v1479_v61 = vrot.slane %v1471_v53, %v6159_v33  ;;  %v1486_v62 = vrot.slane %v1472_v54, %v6159_v33 }
 0x299   : > { %v1673_v63 = vcombine.low %v1645_v55, %v1652_v56  ;;  %v4437_v1 = vcombine.high %v1645_v55, %v1652_v56  ;;  %v1689_v2 = vcombine.low %v1661_v57, %v1668_v58  ;;  %v4438_v3 = vcombine.high %v1661_v57, %v1668_v58 }
 0x29a   : > { %v1487_v4 = vcombine.low %v1463_v59, %v1479_v61  ;;  %v1488_v5 = vcombine.high %v1463_v59, %v1479_v61  ;;  %v1503_v7 = vcombine.low %v1470_v60, %v1486_v62  ;;  %v1504_v8 = vcombine.high %v1470_v60, %v1486_v62 }
 0x29b   : > { %v1680_v9 = vrot.slane %v1673_v63, %v6159_v33  ;;  %v1688_v10 = vrot.slane %v4437_v1, %v6159_v33  ;;  %v1696_v11 = vrot.slane %v1689_v2, %v6159_v33  ;;  %v1704_v12 = vrot.slane %v4438_v3, %v6159_v33  ;;  %v1439_v63 = vpop.f32.mrf.mxu0 }
 0x29c   : > { %v1495_v13 = vrot.slane %v1487_v4, %v6161_v40  ;;  %v1502_v14 = vrot.slane %v1488_v5, %v6161_v40  ;;  %v1511_v15 = vrot.slane %v1503_v7, %v6161_v40  ;;  %v1518_v16 = vrot.slane %v1504_v8, %v6161_v40  ;;  %v1245_v4 = vld [vmem:[%s6082_s3] sm:$0xff]  ;;  %s5690_s3 = smov 16  }
 0x29d   : > { %v1705_v17 = vcombine.low %v1680_v9, %v1688_v10  ;;  %v1721_v18 = vcombine.low %v1696_v11, %v1704_v12  ;;  %v1706_v19 = vcombine.high %v1680_v9, %v1688_v10  ;;  %v1722_v20 = vcombine.high %v1696_v11, %v1704_v12  ;;  %v4593_v1 = vpop.f32.mrf.mxu0 }
 0x29e   : > { %v1523_v21 = vcombine.low %v1495_v13, %v1502_v14  ;;  %v4435_v22 = vcombine.high %v1495_v13, %v1502_v14  ;;  %v1539_v23 = vcombine.low %v1511_v15, %v1518_v16  ;;  %v4436_v24 = vcombine.high %v1511_v15, %v1518_v16 }
 0x29f   : > { %v1713_v25 = vrot.slane %v1705_v17, %v6161_v40  ;;  %v1729_v26 = vrot.slane %v1721_v18, %v6161_v40  ;;  %v1720_v34 = vrot.slane %v1706_v19, %v6161_v40  ;;  %v1736_v35 = vrot.slane %v1722_v20, %v6161_v40  ;;  %v1442_v2 = vpop.f32.mrf.mxu0 }
 0x2a0   : > { %v1530_v27 = vrot.slane %v1523_v21, %v6159_v33  ;;  %v1538_v28 = vrot.slane %v4435_v22, %v6159_v33  ;;  %v1546_v29 = vrot.slane %v1539_v23, %v6159_v33  ;;  %v1554_v30 = vrot.slane %v4436_v24, %v6159_v33 }
 0x2a1   : > { %v1737_v31 = vcombine.low %v1713_v25, %v1729_v26  ;;  %v1738_v32 = vcombine.high %v1713_v25, %v1729_v26  ;;  %v1739_v45 = vcombine.low %v1720_v34, %v1736_v35  ;;  %v1740_v46 = vcombine.high %v1720_v34, %v1736_v35  ;;  %v4594_v3 = vpop.f32.mrf.mxu0 }
 0x2a2   : > { %v1555_v36 = vcombine.low %v1530_v27, %v1538_v28  ;;  %v1571_v37 = vcombine.low %v1546_v29, %v1554_v30  ;;  %v1556_v47 = vcombine.high %v1530_v27, %v1538_v28  ;;  %v1572_v48 = vcombine.high %v1546_v29, %v1554_v30  ;;  %v4431_v30 = vld [vmem:[#allocation13] ss:$0 sm:$0xff] }
 0x2a3   : > { %v1741_v38 = vpack.c.bf16 %v1737_v31, %v1737_v31  ;;  %v1742_v39 = vpack.c.bf16 %v1738_v32, %v1738_v32  ;;  %v1743_v51 = vpack.c.bf16 %v1739_v45, %v1739_v45  ;;  %v1744_v52 = vpack.c.bf16 %v1740_v46, %v1740_v46 }
 0x2a4   : > { %v1563_v41 = vrot.slane %v1555_v36, %v6161_v40  ;;  %v1579_v42 = vrot.slane %v1571_v37, %v6161_v40  ;;  %v1570_v55 = vrot.slane %v1556_v47, %v6161_v40  ;;  %v1586_v56 = vrot.slane %v1572_v48, %v6161_v40 }
 0x2a5   : > { %v1900_v43 = vsel %vm1895_vm2, %v1741_v38, 0  ;;  %v1946_v44 = vsel %vm1895_vm2, %v1742_v39, 0  ;;  %v1992_v57 = vsel %vm1895_vm2, %v1743_v51, 0  ;;  %v2038_v58 = vsel %vm1895_vm2, %v1744_v52, 0 }
 0x2a6   : > { %4596 = vmatpush3.bf16.xpose.msra.mxu1 %v1900_v43  ;;  %4602 = vmatpush3.bf16.xpose.msra.mxu0 %v1946_v44  ;;  %v1587_v49 = vcombine.low %v1563_v41, %v1579_v42  ;;  %v1588_v50 = vcombine.high %v1563_v41, %v1579_v42  ;;  %v1589_v59 = vcombine.low %v1570_v55, %v1586_v56 }
 0x2a7   : > { %4607 = vmatprep.subr.bf16.mxu1 %v5683_v0  ;;  %4613 = vmatprep.subr.bf16.mxu0 %v5683_v0  ;;  %v1590_v60 = vcombine.high %v1570_v55, %v1586_v56  ;;  %v1440_v31 = vadd.f32 %v4431_v30, %v1439_v63 }
 0x2a8   : > { %v1591_v53 = vpack.c.bf16 %v1587_v49, %v1587_v49  ;;  %v1592_v54 = vpack.c.bf16 %v1588_v50, %v1588_v50  ;;  %v1593_v61 = vpack.c.bf16 %v1589_v59, %v1589_v59 }
 0x2a9   : > { %v1594_v62 = vpack.c.bf16 %v1590_v60, %v1590_v60 }
 0x2ad   : > { %4598 = vmatmul.mubr.msk.bf16.vlgmr.msra.gmra.mxu1 %vm1895_vm2, %v1591_v53  ;;  %4604 = vmatmul.mubr.msk.bf16.vlgmr.msra.gmra.mxu0 %vm1895_vm2, %v1592_v54 }
 0x2ae   : > { %4608 = vmatpush3.bf16.xpose.msra.mxu1 %v1992_v57  ;;  %4614 = vmatpush3.bf16.xpose.msra.mxu0 %v2038_v58 }
 0x2af   : > { %4609 = vmatprep.mubr.msk.bf16.mxu1 %vm5684_vm0, %v5683_v0  ;;  %4615 = vmatprep.mubr.msk.bf16.mxu0 %vm5684_vm0, %v5683_v0 }
 0x2b0   : > { %4619 = vmatprep.subr.bf16.mxu1 %v5683_v0  ;;  %4625 = vmatprep.subr.bf16.mxu0 %v5683_v0 }
 0x2b5   : > { %4610 = vmatmul.mubr.msk.bf16.vlgmr.msra.gmra.mxu1 %vm1895_vm2, %v1593_v61  ;;  %4616 = vmatmul.mubr.msk.bf16.vlgmr.msra.gmra.mxu0 %vm1895_vm2, %v1594_v62 }
 0x2b6   : > { %4621 = vmatprep.mubr.msk.bf16.mxu1 %vm5684_vm0, %v5683_v0  ;;  %4627 = vmatprep.mubr.msk.bf16.mxu0 %vm5684_vm0, %v5683_v0 }
 0x36d   : > { %v1936_v5 = vpop.f32.mrf.mxu1  ;;  %v1982_v7 = vpop.f32.mrf.mxu0 }
 0x36e   : > { %v1937_v8 = vadd.f32 %v1936_v5, %v1245_v4  ;;  %v1983_v9 = vadd.f32 %v1982_v7, %v1245_v4 }
 0x36f   : > { %v4599_v10 = vpop.f32.mrf.mxu1  ;;  %v4605_v11 = vpop.f32.mrf.mxu0 }
 0x370   : > { %v2080_v12 = vsel %vm1895_vm2, %v1937_v8, -inf  ;;  %v2083_v13 = vsel %vm1895_vm2, %v1983_v9, -inf }
 0x371   : > { %2081 = vmax.xlane.f32.xlu0 %v2080_v12  ;;  %v1939_v14 = vpop.f32.mrf.mxu1  ;;  %2084 = vmax.xlane.f32.xlu1 %v2083_v13  ;;  %v1985_v15 = vpop.f32.mrf.mxu0 }
 0x373   : > { %v4600_v16 = vpop.f32.mrf.mxu1  ;;  %v4606_v17 = vpop.f32.mrf.mxu0 }
 0x375   : > { %v2028_v18 = vpop.f32.mrf.mxu1  ;;  %v2074_v19 = vpop.f32.mrf.mxu0 }
 0x376   : > { %v2029_v20 = vadd.f32 %v2028_v18, %v1245_v4  ;;  %v2075_v23 = vadd.f32 %v2074_v19, %v1245_v4 }
 0x377   : > { %v4611_v21 = vpop.f32.mrf.mxu1  ;;  %v4617_v22 = vpop.f32.mrf.mxu0 }
 0x378   : > { %v2086_v24 = vsel %vm1895_vm2, %v2029_v20, -inf  ;;  %v2089_v29 = vsel %vm1895_vm2, %v2075_v23, -inf }
 0x379   : > { %2087 = vmax.xlane.f32.xlu0 %v2086_v24  ;;  %v2031_v25 = vpop.f32.mrf.mxu1  ;;  %v2077_v26 = vpop.f32.mrf.mxu0 }
 0x37b   : > { %v4612_v27 = vpop.f32.mrf.mxu1  ;;  %v4618_v28 = vpop.f32.mrf.mxu0 }
 0x37d   : > { %2090 = vmax.xlane.f32.xlu0 %v2089_v29 }
 0x382   : > { %1746 = vrot.lane.b32.xlu1 %v1440_v31, %s5686_s26 }
 0x3fa   : > { %v2082_v32 = vpop.xlane.xlu0 %2081  ;;  %v2085_v34 = vpop.xlane.xlu1 %2084 }
 0x3fb   : > { %v2092_v35 = vsub.f32 %v1937_v8, %v2082_v32  ;;  %v2093_v36 = vsub.f32 %v1983_v9, %v2085_v34 }
 0x3fd   : > { %v2096_v37 = vmul.f32 1.442695, %v2092_v35  ;;  %v2098_v38 = vmul.f32 1.442695, %v2093_v36 }
 0x3fe   : > { %v1747_v54 = vpop.permute.xlu1 %1746 }
 0x3ff   : > { %5038 = vpow2.f32 %v2096_v37 }
 0x400   : > { %5040 = vpow2.f32 %v2098_v38 }
 0x402   : > { %v2088_v44 = vpop.xlane.xlu0 %2087 }
 0x403   : > { %v2094_v46 = vsub.f32 %v2029_v20, %v2088_v44 }
 0x405   : > { %v2100_v48 = vmul.f32 1.442695, %v2094_v46 }
 0x406   : > { %v2091_v45 = vpop.xlane.xlu0 %2090 }
 0x407   : > { %v2095_v47 = vsub.f32 %v2075_v23, %v2091_v45  ;;  %5042 = vpow2.f32 %v2100_v48 }
 0x409   : > { %v2102_v49 = vmul.f32 1.442695, %v2095_v47 }
 0x40b   : > { %5044 = vpow2.f32 %v2102_v49 }
 0x40c   : > { %v6221_v39 = vpop.eup %5038 }
 0x40d   : > { %v6223_v41 = vpop.eup %5040  ;;  %v2104_v42 = vsel %vm1895_vm2, %v6221_v39, 0.0 }
 0x40e   : > { %2105 = vadd.xlane.f32.xlu1 %v2104_v42  ;;  %v2107_v43 = vsel %vm1895_vm2, %v6223_v41, 0.0 }
 0x40f   : > { %2108 = vadd.xlane.f32.xlu0 %v2107_v43 }
 0x414   : > { %v6231_v50 = vpop.eup %5042 }
 0x415   : > { %v2110_v52 = vsel %vm1895_vm2, %v6231_v50, 0.0 }
 0x418   : > { %v6233_v51 = vpop.eup %5044 }
 0x419   : > { %v2113_v53 = vsel %vm1895_vm2, %v6233_v51, 0.0 }
 0x41f   : > { %1752 = vrot.lane.b32.xlu1 %v1440_v31, %s5685_s10 }
 0x425   : > { %1749 = vrot.lane.b32.xlu0 %v1440_v31, %s5687_s29 }
 0x443   : > { %2111 = vadd.xlane.f32.xlu1 %v2110_v52 }
 0x444   : > { %2114 = vadd.xlane.f32.xlu0 %v2113_v53 }
 0x497   : > { %v2106_v55 = vpop.xlane.xlu1 %2105 }
 0x498   : > { %v2109_v56 = vpop.xlane.xlu0 %2108  ;;  %5046 = vrcp.f32 %v2106_v55 }
 0x499   : > { %5048 = vrcp.f32 %v2109_v56 }
 0x49b   : > { %v1753_v57 = vpop.permute.xlu1 %1752 }
 0x49c   : > { %v1771_v58 = vcombine.low %v1747_v54, %v1753_v57  ;;  %v1772_v59 = vcombine.high %v1747_v54, %v1753_v57  ;;  %v1750_v60 = vpop.permute.xlu0 %1749 }
 0x49d   : > { %v1755_v61 = vcombine.low %v1440_v31, %v1750_v60  ;;  %v1756_v62 = vcombine.high %v1440_v31, %v1750_v60 }
 0x49e   : > { %v1779_v63 = vrot.slane %v1771_v58, %v6159_v33  ;;  %v1786_v1 = vrot.slane %v1772_v59, %v6159_v33 }
 0x49f   : > { %v1763_v2 = vrot.slane %v1755_v61, %v6159_v33  ;;  %v1770_v3 = vrot.slane %v1756_v62, %v6159_v33 }
 0x4a1   : > { %v1787_v4 = vcombine.low %v1763_v2, %v1779_v63  ;;  %v1788_v5 = vcombine.high %v1763_v2, %v1779_v63  ;;  %v1803_v7 = vcombine.low %v1770_v3, %v1786_v1  ;;  %v1804_v8 = vcombine.high %v1770_v3, %v1786_v1 }
 0x4a3   : > { %v1795_v9 = vrot.slane %v1787_v4, %v6161_v40  ;;  %v1802_v10 = vrot.slane %v1788_v5, %v6161_v40  ;;  %v1811_v11 = vrot.slane %v1803_v7, %v6161_v40  ;;  %v1818_v12 = vrot.slane %v1804_v8, %v6161_v40 }
 0x4a5   : > { %v1823_v13 = vcombine.low %v1795_v9, %v1802_v10  ;;  %v4439_v14 = vcombine.high %v1795_v9, %v1802_v10  ;;  %v1839_v15 = vcombine.low %v1811_v11, %v1818_v12  ;;  %v4440_v16 = vcombine.high %v1811_v11, %v1818_v12  ;;  %v5047_v25 = vpop.eup %5046 }
 0x4a6   : > { %v5049_v30 = vpop.eup %5048  ;;  %v2120_v38 = vmul.f32 %v5047_v25, %v6221_v39 }
 0x4a7   : > { %v1830_v17 = vrot.slane %v1823_v13, %v6159_v33  ;;  %v1838_v18 = vrot.slane %v4439_v14, %v6159_v33  ;;  %v1846_v19 = vrot.slane %v1839_v15, %v6159_v33  ;;  %v1854_v20 = vrot.slane %v4440_v16, %v6159_v33 }
 0x4a8   : > { %v2121_v42 = vmul.f32 %v5049_v30, %v6223_v41  ;;  %v2124_v47 = vpack.c.bf16 %v2120_v38, %v2120_v38 }
 0x4a9   : > { %v1855_v21 = vcombine.low %v1830_v17, %v1838_v18  ;;  %v1871_v22 = vcombine.low %v1846_v19, %v1854_v20  ;;  %v1856_v23 = vcombine.high %v1830_v17, %v1838_v18  ;;  %v1872_v24 = vcombine.high %v1846_v19, %v1854_v20 }
 0x4aa   : > { %v2125_v48 = vpack.c.bf16 %v2121_v42, %v2121_v42 }
 0x4ab   : > { %v1863_v26 = vrot.slane %v1855_v21, %v6161_v40  ;;  %v1879_v27 = vrot.slane %v1871_v22, %v6161_v40  ;;  %v1870_v28 = vrot.slane %v1856_v23, %v6161_v40  ;;  %v1886_v29 = vrot.slane %v1872_v24, %v6161_v40  ;;  %v5022_v22 = vld [vmem:[%s6624_s9 + $0x8] sm:$0xff]  }
 0x4ad   : > { %v1887_v31 = vcombine.low %v1863_v26, %v1879_v27  ;;  %v1888_v32 = vcombine.high %v1863_v26, %v1879_v27  ;;  %v1889_v34 = vcombine.low %v1870_v28, %v1886_v29  ;;  %v1890_v35 = vcombine.high %v1870_v28, %v1886_v29 }
 0x4af   : > { %v1891_v36 = vpack.c.bf16 %v1887_v31, %v1887_v31  ;;  %v1892_v37 = vpack.c.bf16 %v1888_v32, %v1888_v32  ;;  %v1893_v45 = vpack.c.bf16 %v1889_v34, %v1889_v34  ;;  %v1894_v46 = vpack.c.bf16 %v1890_v35, %v1890_v35  ;;  %v5023_v32 = vld [vmem:[%s6624_s9] sm:$0xff]  }
 0x4b1   : > { %v2133_v43 = vsel %vm2131_vm3, %v1891_v36, 0  ;;  %v2179_v44 = vsel %vm2131_vm3, %v1892_v37, 0  ;;  %v2225_v39 = vsel %vm2131_vm3, %v1893_v45, 0  ;;  %v2271_v41 = vsel %vm2131_vm3, %v1894_v46, 0 }
 0x4b2   : > { %4620 = vmatpush3.bf16.msra.mxu1 %v2133_v43  ;;  %4626 = vmatpush3.bf16.msra.mxu0 %v2179_v44 }
 0x4b3   : > { %4631 = vmatprep.subr.bf16.mxu1 %v5683_v0  ;;  %4637 = vmatprep.subr.bf16.mxu0 %v5683_v0 }
 0x4b5   : > { %4622 = vmatmul.mubr.msk.bf16.vlgmr.msra.gmra.mxu1 %vm1895_vm2, %v2124_v47  ;;  %4628 = vmatmul.mubr.msk.bf16.vlgmr.msra.gmra.mxu0 %vm1895_vm2, %v2125_v48 }
 0x4b6   : > { %4632 = vmatpush3.bf16.msra.mxu1 %v2225_v39  ;;  %4638 = vmatpush3.bf16.msra.mxu0 %v2271_v41 }
 0x4b7   : > { %4633 = vmatprep.mubr.msk.bf16.mxu1 %vm5684_vm0, %v5683_v0  ;;  %4639 = vmatprep.mubr.msk.bf16.mxu0 %vm5684_vm0, %v5683_v0 }
 0x4b8   : > { %4643 = vmatprep.subr.bf16.mxu1 %v5683_v0  ;;  %4651 = vmatprep.subr.bf16.mxu0 %v5683_v0 }
 0x4cc   : > { %v2112_v49 = vpop.xlane.xlu1 %2111 }
 0x4cd   : > { %5050 = vrcp.f32 %v2112_v49  ;;  %v2115_v52 = vpop.xlane.xlu0 %2114 }
 0x4ce   : > { %5052 = vrcp.f32 %v2115_v52 }
 0x4da   : > { %v5051_v53 = vpop.eup %5050 }
 0x4db   : > { %v5053_v54 = vpop.eup %5052  ;;  %v2122_v55 = vmul.f32 %v5051_v53, %v6231_v50 }
 0x4dc   : > { %v2123_v56 = vmul.f32 %v5053_v54, %v6233_v51 }
 0x4dd   : > { %v2126_v57 = vpack.c.bf16 %v2122_v55, %v2122_v55 }
 0x4de   : > { %v2127_v58 = vpack.c.bf16 %v2123_v56, %v2123_v56 }
 0x4df   : > { %4634 = vmatmul.mubr.msk.bf16.vlgmr.msra.gmra.mxu1 %vm1895_vm2, %v2126_v57 }
 0x4e0   : > { %4640 = vmatmul.mubr.msk.bf16.vlgmr.msra.gmra.mxu0 %vm1895_vm2, %v2127_v58  ;;  %4647 = vmatprep.mubr.msk.bf16.mxu1 %vm5684_vm0, %v5683_v0 }
 0x4e1   : > { %4655 = vmatprep.mubr.msk.bf16.mxu0 %vm5684_vm0, %v5683_v0  ;;  %4644 = vmatpush3.bf16.msra.mxu1 %v5022_v22 }
 0x4e2   : > { %4645 = vmatprep.subr.bf16.mxu1 %v5683_v0 }
 0x4e5   : > { %4646 = vmatpush3.bf16.msra.mxu1 %v5023_v32 }
 0x4e6   : > { %4659 = vmatprep.subr.bf16.mxu1 %v5683_v0 }
 0x575   : > { %v2169_v59 = vpop.f32.mrf.mxu1  ;;  %v2215_v60 = vpop.f32.mrf.mxu0 }
 0x577   : > { %v4623_v61 = vpop.f32.mrf.mxu1  ;;  %v4629_v62 = vpop.f32.mrf.mxu0 }
 0x578   : > { %v5025_v61 = vld [vmem:[#allocation22] sm:$0xff]  }
 0x579   : > { %v2172_v63 = vpop.f32.mrf.mxu1  ;;  %v2218_v50 = vpop.f32.mrf.mxu0  ;;  %v1244_v62 = vld [vmem:[%s1240_s21] sm:$0xff]  ;;  %s6635_s21 = sld [smem:[#allocation63_spill]] }
 0x57a   : > { %v6311_v63 = vpack.c.bf16 %v1244_v62, %v1244_v62  ;;  %v4451_v50 = vld [vmem:[#allocation14] ss:$0 sm:$0xff] }
 0x57b   : > { %v4624_v1 = vpop.f32.mrf.mxu1  ;;  %v4630_v51 = vpop.f32.mrf.mxu0 }
 0x59f   : > { %v2261_v2 = vpop.f32.mrf.mxu1 }
 0x5a0   : > { %v2313_v3 = vcombine.low %v2169_v59, %v2261_v2  ;;  %v2314_v4 = vcombine.high %v2169_v59, %v2261_v2  ;;  %v2307_v5 = vpop.f32.mrf.mxu0 }
 0x5a1   : > { %v2329_v7 = vcombine.low %v2215_v60, %v2307_v5  ;;  %v2330_v8 = vcombine.high %v2215_v60, %v2307_v5  ;;  %v4635_v9 = vpop.f32.mrf.mxu1  ;;  %v5024_v60 = vld [vmem:[#allocation22 + $0x8] sm:$0xff]  }
 0x5a2   : > { %v2321_v10 = vrot.slane %v2313_v3, %v6159_v33  ;;  %v2328_v11 = vrot.slane %v2314_v4, %v6159_v33  ;;  %v4641_v12 = vpop.f32.mrf.mxu0 }
 0x5a3   : > { %v2337_v13 = vrot.slane %v2329_v7, %v6159_v33  ;;  %v2344_v14 = vrot.slane %v2330_v8, %v6159_v33  ;;  %v2264_v15 = vpop.f32.mrf.mxu1  ;;  %v4461_v12 = vld [vmem:[#allocation23] ss:$0 sm:$0xff] }
 0x5a4   : > { %v2310_v16 = vpop.f32.mrf.mxu0 }
 0x5a5   : > { %v2345_v17 = vcombine.low %v2321_v10, %v2337_v13  ;;  %v2346_v18 = vcombine.high %v2321_v10, %v2337_v13  ;;  %v2361_v19 = vcombine.low %v2328_v11, %v2344_v14  ;;  %v2362_v20 = vcombine.high %v2328_v11, %v2344_v14  ;;  %v4636_v21 = vpop.f32.mrf.mxu1  ;;  %v5026_v10 = vld [vmem:[#allocation19 + $0x8] sm:$0xff]   ;;  %v5027_v11 = vld [vmem:[#allocation19] sm:$0xff]  }
 0x5a6   : > { %v4642_v23 = vpop.f32.mrf.mxu0  ;;  %4652 = vmatpush3.bf16.msra.mxu0 %v5026_v10 }
 0x5a7   : > { %v2353_v24 = vrot.slane %v2345_v17, %v6161_v40  ;;  %v2360_v25 = vrot.slane %v2346_v18, %v6161_v40  ;;  %v2369_v26 = vrot.slane %v2361_v19, %v6161_v40  ;;  %v2376_v27 = vrot.slane %v2362_v20, %v6161_v40  ;;  %4653 = vmatprep.subr.bf16.mxu0 %v5683_v0 }
 0x5a9   : > { %v2381_v28 = vcombine.low %v2353_v24, %v2360_v25  ;;  %v4449_v29 = vcombine.high %v2353_v24, %v2360_v25  ;;  %v2397_v30 = vcombine.low %v2369_v26, %v2376_v27  ;;  %v4450_v31 = vcombine.high %v2369_v26, %v2376_v27  ;;  %v4455_v26 = vld [vmem:[#allocation16] ss:$0 sm:$0xff] }
 0x5aa   : > { %4654 = vmatpush3.bf16.msra.mxu0 %v5027_v11 }
 0x5ab   : > { %v2388_v34 = vrot.slane %v2381_v28, %v6159_v33  ;;  %v2396_v35 = vrot.slane %v4449_v29, %v6159_v33  ;;  %v2404_v36 = vrot.slane %v2397_v30, %v6159_v33  ;;  %v2412_v37 = vrot.slane %v4450_v31, %v6159_v33  ;;  %4667 = vmatprep.subr.bf16.mxu0 %v5683_v0  ;;  %v4456_v28 = vld [vmem:[#allocation17] ss:$0 sm:$0xff] }
 0x5ad   : > { %v2414_v38 = vcombine.high %v2388_v34, %v2396_v35  ;;  %v2430_v42 = vcombine.high %v2404_v36, %v2412_v37  ;;  %v2413_v43 = vcombine.low %v2388_v34, %v2396_v35  ;;  %v2429_v44 = vcombine.low %v2404_v36, %v2412_v37 }
 0x5af   : > { %v2428_v45 = vrot.slane %v2414_v38, %v6161_v40  ;;  %v2444_v46 = vrot.slane %v2430_v42, %v6161_v40  ;;  %v2421_v47 = vrot.slane %v2413_v43, %v6161_v40  ;;  %v2437_v48 = vrot.slane %v2429_v44, %v6161_v40 }
 0x5b1   : > { %v2447_v39 = vcombine.low %v2428_v45, %v2444_v46  ;;  %v2446_v41 = vcombine.high %v2421_v47, %v2437_v48  ;;  %v2445_v49 = vcombine.low %v2421_v47, %v2437_v48  ;;  %v2448_v52 = vcombine.high %v2428_v45, %v2444_v46 }
 0x5b3   : > { %2454 = vrot.lane.b32.xlu1 %v2447_v39, %s5690_s3  ;;  %2450 = vrot.lane.b32.xlu0 %v2446_v41, %s5691_s6 }
 0x5b7   : > { %2458 = vrot.lane.b32.xlu1 %v2448_v52, %s5692_s11 }
 0x625   : > { %v2455_v53 = vpop.permute.xlu1 %2454  ;;  %v2451_v54 = vpop.permute.xlu0 %2450 }
 0x626   : > { %v2461_v55 = vsel %vm1895_vm2, %v2445_v49, %v2451_v54 }
 0x627   : > { %v2463_v57 = vsel %vm2462_vm4, %v2461_v55, %v2455_v53 }
 0x629   : > { %v2459_v56 = vpop.permute.xlu1 %2458 }
 0x62a   : > { %v2465_v58 = vsel %vm2464_vm5, %v2463_v57, %v2459_v56 }
 0x62b   : > { %v2466_v59 = vpack.c.bf16 %v2465_v58, %v2465_v58 }
 0x62d   : > { %4648 = vmatmul.mubr.msk.bf16.vlgmr.msra.gmra.mxu1 %vm1272_vm1, %v2466_v59 }
 0x62e   : > { %4663 = vmatprep.mubr.msk.bf16.mxu1 %vm5684_vm0, %v5683_v0  ;;  %4660 = vmatpush3.bf16.msra.mxu1 %v5024_v60 }
 0x62f   : > { %4661 = vmatprep.subr.bf16.mxu1 %v5683_v0 }
 0x632   : > { %4662 = vmatpush3.bf16.msra.mxu1 %v5025_v61 }
 0x633   : > { %4675 = vmatprep.subr.bf16.mxu1 %v5683_v0 }
 0x635   : > { %4664 = vmatmul.mubr.msk.bf16.vlgmr.msra.gmra.mxu1 %vm1272_vm1, %v6311_v63 }
 0x636   : > { %4677 = vmatprep.mubr.msk.bf16.mxu1 %vm5684_vm0, %v5683_v0 }
 0x6ed   : > { %v2527_v1 = vpop.f32.mrf.mxu1 }
 0x6ee   : > { %v2528_v51 = vadd.f32 %v4451_v50, %v2527_v1  ;;  %v5028_v50 = vld [vmem:[#allocation25 + $0x8] sm:$0xff]  }
 0x6ef   : > { %v4649_v2 = vpop.f32.mrf.mxu1 }
 0x6f0   : > { %v2533_v3 = vadd.f32 %v2528_v51, %v6136_v6 }
 0x6f1   : > { %v2530_v4 = vpop.f32.mrf.mxu1 }
 0x6f2   : > { %v2536_v5 = vsel %vm1272_vm1, %v2533_v3, 0.0  ;;  %v2541_v7 = vmul.f32 %v2533_v3, %v2533_v3  ;;  %v5029_v4 = vld [vmem:[#allocation25] sm:$0xff]  }
 0x6f3   : > { %2537 = vadd.xlane.f32.xlu0 %v2536_v5  ;;  %v4650_v8 = vpop.f32.mrf.mxu1 }
 0x6f4   : > { %v2542_v9 = vsel %vm1272_vm1, %v2541_v7, 0.0 }
 0x6f5   : > { %2543 = vadd.xlane.f32.xlu1 %v2542_v9  ;;  %v2693_v13 = vpop.f32.mrf.mxu1 }
 0x6f6   : > { %v2694_v6 = vadd.f32 %v4461_v12, %v2693_v13 }
 0x6f7   : > { %v4665_v14 = vpop.f32.mrf.mxu1 }
 0x6f9   : > { %v2696_v15 = vpop.f32.mrf.mxu1 }
 0x6fb   : > { %v4666_v16 = vpop.f32.mrf.mxu1 }
 0x706   : > { %2916 = vrot.lane.b32.xlu1 %v2694_v6, %s5687_s29 }
 0x709   : > { %2913 = vrot.lane.b32.xlu0 %v2694_v6, %s5686_s26 }
 0x70d   : > { %2919 = vrot.lane.b32.xlu0 %v2694_v6, %s5685_s10 }
 0x77c   : > { %v2538_v17 = vpop.xlane.xlu0 %2537 }
 0x77d   : > { %v2540_v18 = vmul.f32 0.03125, %v2538_v17  ;;  %v4457_v17 = vld [vmem:[#allocation20] ss:$0 sm:$0xff] }
 0x77e   : > { %v2544_v19 = vpop.xlane.xlu1 %2543 }
 0x77f   : > { %v2546_v20 = vmul.f32 %v2540_v18, %v2540_v18  ;;  %v2545_v21 = vmul.f32 0.03125, %v2544_v19  ;;  %v2548_v24 = vsub.f32 %v2533_v3, %v2540_v18 }
 0x780   : > { %v2914_v32 = vpop.permute.xlu0 %2913 }
 0x781   : > { %v2547_v22 = vsub.f32 %v2545_v21, %v2546_v20 }
 0x782   : > { %v2917_v34 = vpop.permute.xlu1 %2916 }
 0x783   : > { %v2549_v23 = vadd.f32 1e-05, %v2547_v22  ;;  %v2922_v36 = vcombine.low %v2694_v6, %v2917_v34  ;;  %v2923_v37 = vcombine.high %v2694_v6, %v2917_v34 }
 0x784   : > { %v2920_v35 = vpop.permute.xlu0 %2919 }
 0x785   : > { %5054 = vrsqrt.f32 %v2549_v23  ;;  %v2938_v38 = vcombine.low %v2914_v32, %v2920_v35  ;;  %v2939_v42 = vcombine.high %v2914_v32, %v2920_v35  ;;  %v2930_v43 = vrot.slane %v2922_v36, %v6159_v33 }
 0x786   : > { %v2937_v44 = vrot.slane %v2923_v37, %v6159_v33 }
 0x787   : > { %v2946_v45 = vrot.slane %v2938_v38, %v6159_v33  ;;  %v2953_v46 = vrot.slane %v2939_v42, %v6159_v33 }
 0x789   : > { %v2954_v47 = vcombine.low %v2930_v43, %v2946_v45  ;;  %v2955_v48 = vcombine.high %v2930_v43, %v2946_v45  ;;  %v2970_v39 = vcombine.low %v2937_v44, %v2953_v46  ;;  %v2971_v41 = vcombine.high %v2937_v44, %v2953_v46 }
 0x78b   : > { %v2962_v49 = vrot.slane %v2954_v47, %v6161_v40  ;;  %v2969_v52 = vrot.slane %v2955_v48, %v6161_v40  ;;  %v2978_v53 = vrot.slane %v2970_v39, %v6161_v40  ;;  %v2985_v54 = vrot.slane %v2971_v41, %v6161_v40 }
 0x78d   : > { %v2990_v55 = vcombine.low %v2962_v49, %v2969_v52  ;;  %v4471_v56 = vcombine.high %v2962_v49, %v2969_v52  ;;  %v3006_v57 = vcombine.low %v2978_v53, %v2985_v54  ;;  %v4472_v58 = vcombine.high %v2978_v53, %v2985_v54 }
 0x78f   : > { %v2997_v59 = vrot.slane %v2990_v55, %v6159_v33  ;;  %v3005_v60 = vrot.slane %v4471_v56, %v6159_v33  ;;  %v3013_v61 = vrot.slane %v3006_v57, %v6159_v33  ;;  %v3021_v62 = vrot.slane %v4472_v58, %v6159_v33 }
 0x791   : > { %v3022_v1 = vcombine.low %v2997_v59, %v3005_v60  ;;  %v3038_v51 = vcombine.low %v3013_v61, %v3021_v62  ;;  %v3023_v2 = vcombine.high %v2997_v59, %v3005_v60  ;;  %v3039_v3 = vcombine.high %v3013_v61, %v3021_v62 }
 0x792   : > { %v5055_v25 = vpop.eup %5054 }
 0x793   : > { %v2551_v27 = vmul.f32 %v5055_v25, %v2548_v24  ;;  %v3030_v5 = vrot.slane %v3022_v1, %v6161_v40  ;;  %v3046_v7 = vrot.slane %v3038_v51, %v6161_v40  ;;  %v3037_v8 = vrot.slane %v3023_v2, %v6161_v40 }
 0x794   : > { %v3053_v9 = vrot.slane %v3039_v3, %v6161_v40 }
 0x795   : > { %v2558_v29 = vmul.f32 %v4455_v26, %v2551_v27  ;;  %v3054_v10 = vcombine.low %v3030_v5, %v3046_v7  ;;  %v3055_v11 = vcombine.high %v3030_v5, %v3046_v7 }
 0x796   : > { %v6350_v12 = vcombine.low %v3037_v8, %v3053_v9  ;;  %v6352_v13 = vcombine.high %v3037_v8, %v3053_v9 }
 0x797   : > { %v6326_v30 = vadd.f32 %v4456_v28, %v2558_v29  ;;  %v3058_v6 = vpack.c.bf16 %v3054_v10, %v3054_v10  ;;  %v3059_v14 = vpack.c.bf16 %v3055_v11, %v3055_v11 }
 0x798   : > { %v3060_v2 = vpack.c.bf16 %v6350_v12, %v6350_v12  ;;  %v3061_v3 = vpack.c.bf16 %v6352_v13, %v6352_v13 }
 0x799   : > { %v2566_v31 = vpack.c.bf16 %v6326_v30, %v6326_v30  ;;  %v3216_v15 = vsel %vm1895_vm2, %v3058_v6, 0  ;;  %v3262_v16 = vsel %vm1895_vm2, %v3059_v14, 0 }
 0x79a   : > { %4676 = vmatpush3.bf16.xpose.msra.mxu1 %v3216_v15  ;;  %v3308_v9 = vsel %vm1895_vm2, %v3060_v2, 0  ;;  %v3354_v10 = vsel %vm1895_vm2, %v3061_v3, 0 }
 0x79b   : > { %4656 = vmatmul.mubr.msk.bf16.vlgmr.msra.gmra.mxu0 %vm1272_vm1, %v2566_v31  ;;  %4687 = vmatprep.subr.bf16.mxu1 %v5683_v0 }
 0x79c   : > { %4671 = vmatprep.mubr.msk.bf16.mxu0 %vm5684_vm0, %v5683_v0  ;;  %4668 = vmatpush3.bf16.msra.mxu0 %v5028_v50 }
 0x79d   : > { %4669 = vmatprep.subr.bf16.mxu0 %v5683_v0 }
 0x7a0   : > { %4670 = vmatpush3.bf16.msra.mxu0 %v5029_v4 }
 0x7a1   : > { %4681 = vmatprep.subr.bf16.mxu0 %v5683_v0 }
 0x7a3   : > { %4672 = vmatmul.mubr.msk.bf16.vlgmr.msra.gmra.mxu0 %vm1272_vm1, %v6311_v63 }
 0x7a4   : > { %4682 = vmatpush3.bf16.xpose.msra.mxu0 %v3262_v16  ;;  %4683 = vmatprep.mubr.msk.bf16.mxu0 %vm5684_vm0, %v5683_v0 }
 0x7a5   : > { %4693 = vmatprep.subr.bf16.mxu0 %v5683_v0 }
 0x85b   : > { %v2627_v18 = vpop.f32.mrf.mxu0 }
 0x85c   : > { %v2628_v19 = vadd.f32 %v4457_v17, %v2627_v18 }
 0x85d   : > { %v4657_v20 = vpop.f32.mrf.mxu0 }
 0x85e   : > { %2766 = vrot.lane.b32.xlu0 %v2628_v19, %s5687_s29  ;;  %2763 = vrot.lane.b32.xlu1 %v2628_v19, %s5686_s26 }
 0x85f   : > { %v2630_v21 = vpop.f32.mrf.mxu0 }
 0x861   : > { %v4658_v22 = vpop.f32.mrf.mxu0 }
 0x862   : > { %2769 = vrot.lane.b32.xlu1 %v2628_v19, %s5685_s10 }
 0x863   : > { %v6366_v63 = vpop.f32.mrf.mxu0 }
 0x865   : > { %v4673_v23 = vpop.f32.mrf.mxu0 }
 0x867   : > { %v2759_v24 = vpop.f32.mrf.mxu0 }
 0x869   : > { %v4674_v25 = vpop.f32.mrf.mxu0 }
 0x8d0   : > { %v2767_v26 = vpop.permute.xlu0 %2766  ;;  %v2764_v27 = vpop.permute.xlu1 %2763 }
 0x8d1   : > { %v2772_v28 = vcombine.low %v2628_v19, %v2767_v26  ;;  %v2773_v29 = vcombine.high %v2628_v19, %v2767_v26 }
 0x8d3   : > { %v2780_v35 = vrot.slane %v2772_v28, %v6159_v33  ;;  %v2787_v36 = vrot.slane %v2773_v29, %v6159_v33 }
 0x8d4   : > { %v2770_v31 = vpop.permute.xlu1 %2769 }
 0x8d5   : > { %v2788_v32 = vcombine.low %v2764_v27, %v2770_v31  ;;  %v2789_v34 = vcombine.high %v2764_v27, %v2770_v31 }
 0x8d7   : > { %v2796_v37 = vrot.slane %v2788_v32, %v6159_v33  ;;  %v2803_v38 = vrot.slane %v2789_v34, %v6159_v33  ;;  %v4465_v34 = vld [vmem:[%s6626_s28] ss:$0 sm:$0xff]  ;;  %s4504_s28 = sshll.u32 %s5624_s0, 7 }
 0x8d9   : > { %v2804_v42 = vcombine.low %v2780_v35, %v2796_v37  ;;  %v2805_v43 = vcombine.high %v2780_v35, %v2796_v37  ;;  %v2820_v44 = vcombine.low %v2787_v36, %v2803_v38  ;;  %v2821_v45 = vcombine.high %v2787_v36, %v2803_v38 }
 0x8da   : > { %v2757_v37 = vadd.f32 %v4465_v34, %v6366_v63 }
 0x8db   : > { %v2812_v46 = vrot.slane %v2804_v42, %v6161_v40  ;;  %v2819_v47 = vrot.slane %v2805_v43, %v6161_v40  ;;  %v2828_v48 = vrot.slane %v2820_v44, %v6161_v40  ;;  %v2835_v39 = vrot.slane %v2821_v45, %v6161_v40 }
 0x8dd   : > { %v2840_v41 = vcombine.low %v2812_v46, %v2819_v47  ;;  %v4469_v49 = vcombine.high %v2812_v46, %v2819_v47  ;;  %v2856_v52 = vcombine.low %v2828_v48, %v2835_v39  ;;  %v4470_v53 = vcombine.high %v2828_v48, %v2835_v39 }
 0x8df   : > { %v2847_v54 = vrot.slane %v2840_v41, %v6159_v33  ;;  %v2855_v55 = vrot.slane %v4469_v49, %v6159_v33  ;;  %v2863_v56 = vrot.slane %v2856_v52, %v6159_v33  ;;  %v2871_v57 = vrot.slane %v4470_v53, %v6159_v33 }
 0x8e1   : > { %v2872_v58 = vcombine.low %v2847_v54, %v2855_v55  ;;  %v2888_v59 = vcombine.low %v2863_v56, %v2871_v57  ;;  %v2873_v60 = vcombine.high %v2847_v54, %v2855_v55  ;;  %v2889_v61 = vcombine.high %v2863_v56, %v2871_v57 }
 0x8e3   : > { %v2880_v62 = vrot.slane %v2872_v58, %v6161_v40  ;;  %v2896_v50 = vrot.slane %v2888_v59, %v6161_v40  ;;  %v2887_v7 = vrot.slane %v2873_v60, %v6161_v40  ;;  %v2903_v8 = vrot.slane %v2889_v61, %v6161_v40 }
 0x8e5   : > { %v2904_v1 = vcombine.low %v2880_v62, %v2896_v50  ;;  %v2905_v51 = vcombine.high %v2880_v62, %v2896_v50  ;;  %v2906_v11 = vcombine.low %v2887_v7, %v2903_v8  ;;  %v2907_v12 = vcombine.high %v2887_v7, %v2903_v8 }
 0x8e7   : > { %v2908_v4 = vpack.c.bf16 %v2904_v1, %v2904_v1  ;;  %v2909_v5 = vpack.c.bf16 %v2905_v51, %v2905_v51  ;;  %v2910_v13 = vpack.c.bf16 %v2906_v11, %v2906_v11  ;;  %v2911_v6 = vpack.c.bf16 %v2907_v12, %v2907_v12 }
 0x8e9   : > { %4678 = vmatmul.mubr.msk.bf16.vlgmr.msra.gmra.mxu1 %vm1895_vm2, %v2908_v4  ;;  %4684 = vmatmul.mubr.msk.bf16.vlgmr.msra.gmra.mxu0 %vm1895_vm2, %v2909_v5 }
 0x8ea   : > { %4688 = vmatpush3.bf16.xpose.msra.mxu1 %v3308_v9  ;;  %4694 = vmatpush3.bf16.xpose.msra.mxu0 %v3354_v10 }
 0x8eb   : > { %4689 = vmatprep.mubr.msk.bf16.mxu1 %vm5684_vm0, %v5683_v0  ;;  %4695 = vmatprep.mubr.msk.bf16.mxu0 %vm5684_vm0, %v5683_v0 }
 0x8ec   : > { %4699 = vmatprep.subr.bf16.mxu1 %v5683_v0  ;;  %4705 = vmatprep.subr.bf16.mxu0 %v5683_v0 }
 0x8f1   : > { %4690 = vmatmul.mubr.msk.bf16.vlgmr.msra.gmra.mxu1 %vm1895_vm2, %v2910_v13  ;;  %4696 = vmatmul.mubr.msk.bf16.vlgmr.msra.gmra.mxu0 %vm1895_vm2, %v2911_v6 }
 0x8f2   : > { %4701 = vmatprep.mubr.msk.bf16.mxu1 %vm5684_vm0, %v5683_v0  ;;  %4707 = vmatprep.mubr.msk.bf16.mxu0 %vm5684_vm0, %v5683_v0 }
 0x9a9   : > { %v3252_v14 = vpop.f32.mrf.mxu1  ;;  %v3298_v15 = vpop.f32.mrf.mxu0 }
 0x9aa   : > { %v3396_v16 = vsel %vm1895_vm2, %v3252_v14, -inf  ;;  %v3399_v17 = vsel %vm1895_vm2, %v3298_v15, -inf }
 0x9ab   : > { %3397 = vmax.xlane.f32.xlu0 %v3396_v16  ;;  %v4679_v18 = vpop.f32.mrf.mxu1  ;;  %3400 = vmax.xlane.f32.xlu1 %v3399_v17  ;;  %v4685_v19 = vpop.f32.mrf.mxu0 }
 0x9ad   : > { %v3255_v20 = vpop.f32.mrf.mxu1  ;;  %v3301_v21 = vpop.f32.mrf.mxu0 }
 0x9af   : > { %v4680_v22 = vpop.f32.mrf.mxu1  ;;  %v4686_v23 = vpop.f32.mrf.mxu0 }
 0x9b1   : > { %v3344_v24 = vpop.f32.mrf.mxu1  ;;  %v3390_v25 = vpop.f32.mrf.mxu0 }
 0x9b2   : > { %v3402_v26 = vsel %vm1895_vm2, %v3344_v24, -inf  ;;  %v3405_v32 = vsel %vm1895_vm2, %v3390_v25, -inf }
 0x9b3   : > { %3403 = vmax.xlane.f32.xlu0 %v3402_v26  ;;  %v4691_v27 = vpop.f32.mrf.mxu1  ;;  %v4697_v28 = vpop.f32.mrf.mxu0 }
 0x9b5   : > { %v3347_v29 = vpop.f32.mrf.mxu1  ;;  %v3393_v31 = vpop.f32.mrf.mxu0 }
 0x9b7   : > { %v4692_v35 = vpop.f32.mrf.mxu1  ;;  %3406 = vmax.xlane.f32.xlu0 %v3405_v32  ;;  %v4698_v36 = vpop.f32.mrf.mxu0 }
 0x9bc   : > { %3063 = vrot.lane.b32.xlu1 %v2757_v37, %s5686_s26  ;;  %s6629_s26 = sld [smem:[#allocation55_spill]] }
 0xa34   : > { %v3398_v38 = vpop.xlane.xlu0 %3397  ;;  %v3401_v42 = vpop.xlane.xlu1 %3400 }
 0xa35   : > { %v3408_v43 = vsub.f32 %v3252_v14, %v3398_v38  ;;  %v3409_v44 = vsub.f32 %v3298_v15, %v3401_v42 }
 0xa37   : > { %v3412_v45 = vmul.f32 1.442695, %v3408_v43  ;;  %v3414_v46 = vmul.f32 1.442695, %v3409_v44 }
 0xa38   : > { %v3064_v60 = vpop.permute.xlu1 %3063 }
 0xa39   : > { %5056 = vpow2.f32 %v3412_v45 }
 0xa3a   : > { %5058 = vpow2.f32 %v3414_v46 }
 0xa3c   : > { %v3404_v41 = vpop.xlane.xlu0 %3403 }
 0xa3d   : > { %v3410_v52 = vsub.f32 %v3344_v24, %v3404_v41 }
 0xa3f   : > { %v3416_v54 = vmul.f32 1.442695, %v3410_v52 }
 0xa40   : > { %v3407_v49 = vpop.xlane.xlu0 %3406 }
 0xa41   : > { %v3411_v53 = vsub.f32 %v3390_v25, %v3407_v49  ;;  %5060 = vpow2.f32 %v3416_v54 }
 0xa43   : > { %v3418_v55 = vmul.f32 1.442695, %v3411_v53 }
 0xa45   : > { %5062 = vpow2.f32 %v3418_v55 }
 0xa46   : > { %v6411_v47 = vpop.eup %5056 }
 0xa47   : > { %v6413_v48 = vpop.eup %5058  ;;  %v3420_v39 = vsel %vm1895_vm2, %v6411_v47, 0.0 }
 0xa48   : > { %3421 = vadd.xlane.f32.xlu1 %v3420_v39  ;;  %v3423_v63 = vsel %vm1895_vm2, %v6413_v48, 0.0 }
 0xa49   : > { %3424 = vadd.xlane.f32.xlu0 %v3423_v63 }
 0xa4e   : > { %v6421_v56 = vpop.eup %5060 }
 0xa4f   : > { %v3426_v58 = vsel %vm1895_vm2, %v6421_v56, 0.0 }
 0xa52   : > { %v6423_v57 = vpop.eup %5062 }
 0xa53   : > { %v3429_v59 = vsel %vm1895_vm2, %v6423_v57, 0.0 }
 0xa59   : > { %3069 = vrot.lane.b32.xlu1 %v2757_v37, %s5685_s10  ;;  %s6628_s10 = sld [smem:[#allocation59_spill]] }
 0xa5f   : > { %3066 = vrot.lane.b32.xlu0 %v2757_v37, %s5687_s29  ;;  %s6630_s29 = sld [smem:[#allocation56_spill]] }
 0xa7d   : > { %3427 = vadd.xlane.f32.xlu1 %v3426_v58 }
 0xa7e   : > { %3430 = vadd.xlane.f32.xlu0 %v3429_v59 }
 0xad1   : > { %v3422_v61 = vpop.xlane.xlu1 %3421 }
 0xad2   : > { %v3425_v62 = vpop.xlane.xlu0 %3424  ;;  %5064 = vrcp.f32 %v3422_v61 }
 0xad3   : > { %5066 = vrcp.f32 %v3425_v62 }
 0xad5   : > { %v3070_v50 = vpop.permute.xlu1 %3069 }
 0xad6   : > { %v3088_v1 = vcombine.low %v3064_v60, %v3070_v50  ;;  %v3089_v51 = vcombine.high %v3064_v60, %v3070_v50  ;;  %v3067_v2 = vpop.permute.xlu0 %3066 }
 0xad7   : > { %v3072_v3 = vcombine.low %v2757_v37, %v3067_v2  ;;  %v3073_v4 = vcombine.high %v2757_v37, %v3067_v2 }
 0xad8   : > { %v3096_v5 = vrot.slane %v3088_v1, %v6159_v33  ;;  %v3103_v7 = vrot.slane %v3089_v51, %v6159_v33 }
 0xad9   : > { %v3080_v8 = vrot.slane %v3072_v3, %v6159_v33  ;;  %v3087_v9 = vrot.slane %v3073_v4, %v6159_v33 }
 0xadb   : > { %v3104_v10 = vcombine.low %v3080_v8, %v3096_v5  ;;  %v3105_v11 = vcombine.high %v3080_v8, %v3096_v5  ;;  %v3120_v12 = vcombine.low %v3087_v9, %v3103_v7  ;;  %v3121_v13 = vcombine.high %v3087_v9, %v3103_v7 }
 0xadd   : > { %v3112_v6 = vrot.slane %v3104_v10, %v6161_v40  ;;  %v3119_v14 = vrot.slane %v3105_v11, %v6161_v40  ;;  %v3128_v15 = vrot.slane %v3120_v12, %v6161_v40  ;;  %v3135_v16 = vrot.slane %v3121_v13, %v6161_v40 }
 0xadf   : > { %v3140_v17 = vcombine.low %v3112_v6, %v3119_v14  ;;  %v4473_v18 = vcombine.high %v3112_v6, %v3119_v14  ;;  %v3156_v19 = vcombine.low %v3128_v15, %v3135_v16  ;;  %v4474_v20 = vcombine.high %v3128_v15, %v3135_v16  ;;  %v5065_v29 = vpop.eup %5064 }
 0xae0   : > { %v5067_v36 = vpop.eup %5066  ;;  %v3436_v46 = vmul.f32 %v5065_v29, %v6411_v47 }
 0xae1   : > { %v3147_v21 = vrot.slane %v3140_v17, %v6159_v33  ;;  %v3155_v22 = vrot.slane %v4473_v18, %v6159_v33  ;;  %v3163_v23 = vrot.slane %v3156_v19, %v6159_v33  ;;  %v3171_v24 = vrot.slane %v4474_v20, %v6159_v33 }
 0xae2   : > { %v3437_v39 = vmul.f32 %v5067_v36, %v6413_v48  ;;  %v3440_v53 = vpack.c.bf16 %v3436_v46, %v3436_v46 }
 0xae3   : > { %v3172_v25 = vcombine.low %v3147_v21, %v3155_v22  ;;  %v3188_v26 = vcombine.low %v3163_v23, %v3171_v24  ;;  %v3173_v27 = vcombine.high %v3147_v21, %v3155_v22  ;;  %v3189_v28 = vcombine.high %v3163_v23, %v3171_v24 }
 0xae4   : > { %v3441_v54 = vpack.c.bf16 %v3437_v39, %v3437_v39 }
 0xae5   : > { %v3180_v31 = vrot.slane %v3172_v25, %v6161_v40  ;;  %v3196_v32 = vrot.slane %v3188_v26, %v6161_v40  ;;  %v3187_v34 = vrot.slane %v3173_v27, %v6161_v40  ;;  %v3203_v35 = vrot.slane %v3189_v28, %v6161_v40  ;;  %v5030_v26 = vld [vmem:[#allocation26 + $0x8] sm:$0xff]  }
 0xae7   : > { %v3204_v37 = vcombine.low %v3180_v31, %v3196_v32  ;;  %v3205_v38 = vcombine.high %v3180_v31, %v3196_v32  ;;  %v3206_v42 = vcombine.low %v3187_v34, %v3203_v35  ;;  %v3207_v43 = vcombine.high %v3187_v34, %v3203_v35 }
 0xae9   : > { %v3208_v44 = vpack.c.bf16 %v3204_v37, %v3204_v37  ;;  %v3209_v45 = vpack.c.bf16 %v3205_v38, %v3205_v38  ;;  %v3210_v49 = vpack.c.bf16 %v3206_v42, %v3206_v42  ;;  %v3211_v52 = vpack.c.bf16 %v3207_v43, %v3207_v43  ;;  %v5031_v38 = vld [vmem:[#allocation26] sm:$0xff]  }
 0xaeb   : > { %v3448_v63 = vsel %vm2131_vm3, %v3208_v44, 0  ;;  %v3494_v41 = vsel %vm2131_vm3, %v3209_v45, 0  ;;  %v3540_v47 = vsel %vm2131_vm3, %v3210_v49, 0  ;;  %v3586_v48 = vsel %vm2131_vm3, %v3211_v52, 0 }
 0xaec   : > { %4700 = vmatpush3.bf16.msra.mxu1 %v3448_v63  ;;  %4706 = vmatpush3.bf16.msra.mxu0 %v3494_v41 }
 0xaed   : > { %4711 = vmatprep.subr.bf16.mxu1 %v5683_v0  ;;  %4717 = vmatprep.subr.bf16.mxu0 %v5683_v0 }
 0xaef   : > { %4702 = vmatmul.mubr.msk.bf16.vlgmr.msra.gmra.mxu1 %vm1895_vm2, %v3440_v53  ;;  %4708 = vmatmul.mubr.msk.bf16.vlgmr.msra.gmra.mxu0 %vm1895_vm2, %v3441_v54 }
 0xaf0   : > { %4712 = vmatpush3.bf16.msra.mxu1 %v3540_v47  ;;  %4718 = vmatpush3.bf16.msra.mxu0 %v3586_v48 }
 0xaf1   : > { %4713 = vmatprep.mubr.msk.bf16.mxu1 %vm5684_vm0, %v5683_v0  ;;  %4719 = vmatprep.mubr.msk.bf16.mxu0 %vm5684_vm0, %v5683_v0 }
 0xaf2   : > { %4723 = vmatprep.subr.bf16.mxu1 %v5683_v0  ;;  %4731 = vmatprep.subr.bf16.mxu0 %v5683_v0 }
 0xb06   : > { %v3428_v55 = vpop.xlane.xlu1 %3427 }
 0xb07   : > { %5068 = vrcp.f32 %v3428_v55  ;;  %v3431_v58 = vpop.xlane.xlu0 %3430 }
 0xb08   : > { %5070 = vrcp.f32 %v3431_v58 }
 0xb14   : > { %v5069_v59 = vpop.eup %5068 }
 0xb15   : > { %v5071_v60 = vpop.eup %5070  ;;  %v3438_v61 = vmul.f32 %v5069_v59, %v6421_v56 }
 0xb16   : > { %v3439_v62 = vmul.f32 %v5071_v60, %v6423_v57 }
 0xb17   : > { %v3442_v50 = vpack.c.bf16 %v3438_v61, %v3438_v61 }
 0xb18   : > { %v3443_v1 = vpack.c.bf16 %v3439_v62, %v3439_v62 }
 0xb19   : > { %4714 = vmatmul.mubr.msk.bf16.vlgmr.msra.gmra.mxu1 %vm1895_vm2, %v3442_v50 }
 0xb1a   : > { %4720 = vmatmul.mubr.msk.bf16.vlgmr.msra.gmra.mxu0 %vm1895_vm2, %v3443_v1  ;;  %4727 = vmatprep.mubr.msk.bf16.mxu1 %vm5684_vm0, %v5683_v0  ;;  %v4485_v1 = vld [vmem:[%s6627_s13] ss:$0 sm:$0xff]  ;;  %s1225_s13 = scalar_lea.vmem [#allocation29], %s4402_s7 }
 0xb1b   : > { %4735 = vmatprep.mubr.msk.bf16.mxu0 %vm5684_vm0, %v5683_v0  ;;  %4724 = vmatpush3.bf16.msra.mxu1 %v5030_v26  ;;  %v5036_v26 = vld [vmem:[%s6628_s10 + $0x8] sm:$0xff]  }
 0xb1c   : > { %4725 = vmatprep.subr.bf16.mxu1 %v5683_v0 }
 0xb1f   : > { %4726 = vmatpush3.bf16.msra.mxu1 %v5031_v38 }
 0xb20   : > { %4739 = vmatprep.subr.bf16.mxu1 %v5683_v0 }
 0xbaf   : > { %v3484_v51 = vpop.f32.mrf.mxu1  ;;  %v3530_v2 = vpop.f32.mrf.mxu0 }
 0xbb1   : > { %v4703_v3 = vpop.f32.mrf.mxu1  ;;  %v4709_v4 = vpop.f32.mrf.mxu0 }
 0xbb3   : > { %v3487_v5 = vpop.f32.mrf.mxu1  ;;  %v3533_v56 = vpop.f32.mrf.mxu0 }
 0xbb5   : > { %v4704_v7 = vpop.f32.mrf.mxu1  ;;  %v4710_v57 = vpop.f32.mrf.mxu0 }
 0xbd9   : > { %v3576_v8 = vpop.f32.mrf.mxu1 }
 0xbda   : > { %v3628_v9 = vcombine.low %v3484_v51, %v3576_v8  ;;  %v3629_v10 = vcombine.high %v3484_v51, %v3576_v8  ;;  %v3622_v11 = vpop.f32.mrf.mxu0 }
 0xbdb   : > { %v3644_v12 = vcombine.low %v3530_v2, %v3622_v11  ;;  %v3645_v13 = vcombine.high %v3530_v2, %v3622_v11  ;;  %v4715_v6 = vpop.f32.mrf.mxu1  ;;  %v5034_v11 = vld [vmem:[%s6628_s10 + $0x18] sm:$0xff]  }
 0xbdc   : > { %v3636_v14 = vrot.slane %v3628_v9, %v6159_v33  ;;  %v3643_v15 = vrot.slane %v3629_v10, %v6159_v33  ;;  %v4721_v16 = vpop.f32.mrf.mxu0  ;;  %v5032_v9 = vld [vmem:[#allocation28 + $0x8] sm:$0xff]   ;;  %v5033_v10 = vld [vmem:[#allocation28] sm:$0xff]  }
 0xbdd   : > { %v3652_v17 = vrot.slane %v3644_v12, %v6159_v33  ;;  %v3659_v18 = vrot.slane %v3645_v13, %v6159_v33  ;;  %v3579_v19 = vpop.f32.mrf.mxu1  ;;  %4732 = vmatpush3.bf16.msra.mxu0 %v5032_v9  ;;  %v5035_v12 = vld [vmem:[%s6628_s10 + $0x10] sm:$0xff]  }
 0xbde   : > { %v3625_v20 = vpop.f32.mrf.mxu0  ;;  %4733 = vmatprep.subr.bf16.mxu0 %v5683_v0 }
 0xbdf   : > { %v3660_v21 = vcombine.low %v3636_v14, %v3652_v17  ;;  %v3661_v22 = vcombine.high %v3636_v14, %v3652_v17  ;;  %v3676_v23 = vcombine.low %v3643_v15, %v3659_v18  ;;  %v3677_v24 = vcombine.high %v3643_v15, %v3659_v18  ;;  %v4716_v25 = vpop.f32.mrf.mxu1  ;;  %v4489_v20 = vld [vmem:[%s6629_s26] ss:$0 sm:$0xff]  ;;  %s4078_s26 = sshll.u32 %s1225_s13, 4  ;;  %s4079_s26 = int_to_ptr.vmem [resolvable:$true] %s4078_s26 }
 0xbe0   : > { %v4722_v27 = vpop.f32.mrf.mxu0 }
 0xbe1   : > { %v3668_v28 = vrot.slane %v3660_v21, %v6161_v40  ;;  %v3675_v29 = vrot.slane %v3661_v22, %v6161_v40  ;;  %v3684_v31 = vrot.slane %v3676_v23, %v6161_v40  ;;  %v3691_v32 = vrot.slane %v3677_v24, %v6161_v40  ;;  %4734 = vmatpush3.bf16.msra.mxu0 %v5033_v10  ;;  %v4490_v22 = vld [vmem:[%s6630_s29] ss:$0 sm:$0xff]  ;;  %s4076_s29 = scalar_lea.hbm %s6635_s21, %s4504_s28 }
 0xbe2   : > { %v5037_v27 = vld [vmem:[%s6628_s10] sm:$0xff]  }
 0xbe3   : > { %v3696_v34 = vcombine.low %v3668_v28, %v3675_v29  ;;  %v4483_v35 = vcombine.high %v3668_v28, %v3675_v29  ;;  %v3712_v36 = vcombine.low %v3684_v31, %v3691_v32  ;;  %v4484_v37 = vcombine.high %v3684_v31, %v3691_v32 }
 0xbe5   : > { %v3703_v42 = vrot.slane %v3696_v34, %v6159_v33  ;;  %v3711_v43 = vrot.slane %v4483_v35, %v6159_v33  ;;  %v3719_v44 = vrot.slane %v3712_v36, %v6159_v33  ;;  %v3727_v45 = vrot.slane %v4484_v37, %v6159_v33 }
 0xbe7   : > { %v3729_v46 = vcombine.high %v3703_v42, %v3711_v43  ;;  %v3745_v39 = vcombine.high %v3719_v44, %v3727_v45  ;;  %v3728_v63 = vcombine.low %v3703_v42, %v3711_v43  ;;  %v3744_v41 = vcombine.low %v3719_v44, %v3727_v45 }
 0xbe9   : > { %v3743_v49 = vrot.slane %v3729_v46, %v6161_v40  ;;  %v3759_v52 = vrot.slane %v3745_v39, %v6161_v40  ;;  %v3736_v53 = vrot.slane %v3728_v63, %v6161_v40  ;;  %v3752_v54 = vrot.slane %v3744_v41, %v6161_v40 }
 0xbeb   : > { %v3762_v47 = vcombine.low %v3743_v49, %v3759_v52  ;;  %v3761_v48 = vcombine.high %v3736_v53, %v3752_v54  ;;  %v3760_v55 = vcombine.low %v3736_v53, %v3752_v54  ;;  %v3763_v33 = vcombine.high %v3743_v49, %v3759_v52 }
 0xbed   : > { %3769 = vrot.lane.b32.xlu1 %v3762_v47, %s5690_s3  ;;  %3765 = vrot.lane.b32.xlu0 %v3761_v48, %s5691_s6  ;;  %s6631_s3 = sld [smem:[#allocation58_spill]] }
 0xbee   : > { %s6632_s6 = sld [smem:[#allocation60_spill]] }
 0xbf1   : > { %3773 = vrot.lane.b32.xlu1 %v3763_v33, %s5692_s11  ;;  %s6634_s11 = sld [smem:[#allocation62_spill]] }
 0xbf3   : > { %v4491_v28 = vld [vmem:[%s6631_s3] ss:$0 sm:$0xff]  ;;  %s4064_s3 = scalar_lea.sflag [#allocation4], %s6076_s8 }
 0xbf4   : > { %v4495_v38 = vld [vmem:[%s6632_s6] ss:$0 sm:$0xff]  ;;  %s5520_s6 = scalar_lea.vmem %s4079_s26, 128 }
 0xbf5   : > { %p5521_p13 = scmp.ne.s32.totalorder %s4079_s26, %s5520_s6 }
 0xbf7   : > { %p5522_p6 = pnand %p5521_p13, %p6636_p0 }
 0xbf9   : > { %p5523_p5 = pneg %p5522_p6 }
 0xc5f   : > { %v3770_v58 = vpop.permute.xlu1 %3769  ;;  %v3766_v59 = vpop.permute.xlu0 %3765 }
 0xc60   : > { %v3776_v60 = vsel %vm1895_vm2, %v3760_v55, %v3766_v59  ;;  %v4501_v59 = vld [vmem:[%s6633_s1] ss:$0 sm:$0xff]  ;;  %s5524_s1 = sshll.u32 %s5693_s4, 4  ;;  %s5525_s1 = int_to_ptr.vmem [resolvable:$false] %s5524_s1 }
 0xc61   : > { %v3777_v62 = vsel %vm2462_vm4, %v3776_v60, %v3770_v58  ;;  %p5527_p8 = scmp.lt.s32.totalorder %s4079_s26, %s5525_s1 }
 0xc63   : > { %v3774_v61 = vpop.permute.xlu1 %3773 }
 0xc64   : > { %v3778_v40 = vsel %vm2464_vm5, %v3777_v62, %v3774_v61  ;;  %v4502_v61 = vld [vmem:[%s6634_s11] ss:$0 sm:$0xff]  ;;  %s5526_s11 = scalar_lea.vmem %s5525_s1, 256 }
 0xc65   : > { %v3779_v50 = vpack.c.bf16 %v3778_v40, %v3778_v40  ;;  %p5528_p3 = scmp.lt.s32.totalorder %s5526_s11, %s5520_s6 }
 0xc67   : > { %4728 = vmatmul.mubr.msk.bf16.vlgmr.msra.gmra.mxu1 %vm1272_vm1, %v3779_v50  ;;  %p5529_p2 = por %p5528_p3, %p5527_p8 }
 0xc68   : > { %4747 = vmatprep.mubr.msk.bf16.mxu1 %vm5684_vm0, %v5683_v0  ;;  %4740 = vmatpush3.bf16.msra.mxu1 %v5034_v11 }
 0xc69   : > { %4741 = vmatprep.subr.bf16.mxu1 %v5683_v0  ;;  %p5530_p12 = pnand %p5529_p2, %p5523_p5 }
 0xc6c   : > { %4742 = vmatpush3.bf16.msra.mxu1 %v5035_v12 }
 0xc6d   : > { %4743 = vmatprep.subr.bf16.mxu1 %v5683_v0 }
 0xc70   : > { %4744 = vmatpush3.bf16.msra.mxu1 %v5036_v26 }
 0xc71   : > { %4745 = vmatprep.subr.bf16.mxu1 %v5683_v0 }
 0xc74   : > { %4746 = vmatpush3.bf16.msra.mxu1 %v5037_v27 }
 0xd27   : > { %v3840_v51 = vpop.f32.mrf.mxu1 }
 0xd28   : > { %v3841_v2 = vadd.f32 %v4485_v1, %v3840_v51 }
 0xd29   : > { %v4729_v3 = vpop.f32.mrf.mxu1 }
 0xd2a   : > { %v3846_v4 = vadd.f32 %v3841_v2, %v6326_v30 }
 0xd2b   : > { %v3843_v5 = vpop.f32.mrf.mxu1 }
 0xd2c   : > { %v3849_v56 = vsel %vm1272_vm1, %v3846_v4, 0.0  ;;  %v3853_v7 = vmul.f32 %v3846_v4, %v3846_v4 }
 0xd2d   : > { %3850 = vadd.xlane.f32.xlu0 %v3849_v56  ;;  %v4730_v57 = vpop.f32.mrf.mxu1 }
 0xd2e   : > { %v3854_v8 = vsel %vm1272_vm1, %v3853_v7, 0.0 }
 0xd2f   : > { %3855 = vadd.xlane.f32.xlu1 %v3854_v8 }
 0xdb6   : > { %v3851_v30 = vpop.xlane.xlu0 %3850 }
 0xdb7   : > { %v3852_v13 = vmul.f32 0.03125, %v3851_v30 }
 0xdb8   : > { %v3856_v6 = vpop.xlane.xlu1 %3855 }
 0xdb9   : > { %v3858_v14 = vmul.f32 %v3852_v13, %v3852_v13  ;;  %v3857_v15 = vmul.f32 0.03125, %v3856_v6  ;;  %v3860_v18 = vsub.f32 %v3846_v4, %v3852_v13 }
 0xdbb   : > { %v3859_v16 = vsub.f32 %v3857_v15, %v3858_v14 }
 0xdbd   : > { %v3861_v17 = vadd.f32 1e-05, %v3859_v16 }
 0xdbf   : > { %5072 = vrsqrt.f32 %v3861_v17 }
 0xdcc   : > { %v5073_v19 = vpop.eup %5072 }
 0xdcd   : > { %v3863_v21 = vmul.f32 %v5073_v19, %v3860_v18 }
 0xdcf   : > { %v3870_v23 = vmul.f32 %v4489_v20, %v3863_v21 }
 0xdd1   : > { %v3877_v24 = vadd.f32 %v4490_v22, %v3870_v23 }
 0xdd3   : > { %v3878_v25 = vpack.c.bf16 %v3877_v24, %v3877_v24 }
 0xdd5   : > { %4736 = vmatmul.mubr.msk.bf16.vlgmr.msra.gmra.mxu0 %vm1272_vm1, %v3878_v25 }
 0xe95   : > { %v3939_v29 = vpop.f32.mrf.mxu0 }
 0xe96   : > { %v3940_v31 = vadd.f32 %v4491_v28, %v3939_v29 }
 0xe97   : > { %v4737_v32 = vpop.f32.mrf.mxu0 }
 0xe98   : > { %v3945_v34 = vmax.f32 %v3940_v31, 0.0 }
 0xe99   : > { %v3942_v35 = vpop.f32.mrf.mxu0 }
 0xe9a   : > { %v3946_v36 = vpack.c.bf16 %v3945_v34, %v3945_v34 }
 0xe9b   : > { %v4738_v37 = vpop.f32.mrf.mxu0 }
 0xe9c   : > { %4748 = vmatmul.mubr.msk.bf16.vlgmr.msra.gmra.mxu1 %vm3986_vm6, %v3946_v36 }
 0xf5c   : > { %v4024_v42 = vpop.f32.mrf.mxu1 }
 0xf5d   : > { %v4025_v43 = vadd.f32 %v4495_v38, %v4024_v42 }
 0xf5e   : > { %v4749_v44 = vpop.f32.mrf.mxu1 }
 0xf5f   : > { %v4030_v45 = vadd.f32 %v4025_v43, %v3877_v24 }
 0xf60   : > { %v4027_v46 = vpop.f32.mrf.mxu1 }
 0xf61   : > { %v4033_v0 = vsel %vm1272_vm1, %v4030_v45, 0.0  ;;  %v4037_v39 = vmul.f32 %v4030_v45, %v4030_v45 }
 0xf62   : > { %4034 = vadd.xlane.f32.xlu0 %v4033_v0  ;;  %v4750_v63 = vpop.f32.mrf.mxu1 }
 0xf63   : > { %v4038_v41 = vsel %vm1272_vm1, %v4037_v39, 0.0 }
 0xf66   : > { %4039 = vadd.xlane.f32.xlu0 %v4038_v41 }
 0xfeb   : > { %v4035_v49 = vpop.xlane.xlu0 %4034 }
 0xfec   : > { %v4036_v52 = vmul.f32 0.03125, %v4035_v49 }
 0xfee   : > { %v4042_v54 = vmul.f32 %v4036_v52, %v4036_v52  ;;  %v4044_v33 = vsub.f32 %v4030_v45, %v4036_v52 }
 0xfef   : > { %v4040_v53 = vpop.xlane.xlu0 %4039 }
 0xff0   : > { %v4041_v47 = vmul.f32 0.03125, %v4040_v53 }
 0xff2   : > { %v4043_v48 = vsub.f32 %v4041_v47, %v4042_v54 }
 0xff4   : > { %v4045_v55 = vadd.f32 1e-05, %v4043_v48 }
 0xff6   : > { %5074 = vrsqrt.f32 %v4045_v55 }
0x1003   : > { %v5075_v58 = vpop.eup %5074 }
0x1004   : > { %v4047_v60 = vmul.f32 %v5075_v58, %v4044_v33 }
0x1006   : > { %v4054_v62 = vmul.f32 %v4501_v59, %v4047_v60 }
0x1008   : > { %v4061_v40 = vadd.f32 %v4502_v61, %v4054_v62 }
0x100a   : > { %4062 = vst.msk [vmem:[%s1225_s13] sm:$0xff] %vm1272_vm1, %v4061_v40 }
0x100b   : > { %5533 = shalt.err (!%p5530_p12)
}
0x100c   : > { %s5534_s0 = scalar_lea.hbm %s4076_s29, 128  ;;  %s5538_s8 = scalar_lea.hbm %s6635_s21, 256 }
0x100d   : > { %p5535_p7 = scmp.ne.s32.totalorder %s4076_s29, %s5534_s0  ;;  %p5539_p9 = scmp.lt.s32.totalorder %s4076_s29, %s6635_s21 }
0x100e   : > { %p5540_p11 = scmp.lt.s32.totalorder %s5538_s8, %s5534_s0 }
0x100f   : > { %p5536_p1 = pnand %p5535_p7, %p6636_p0 }
0x1010   : > { %p5541_p10 = por %p5540_p11, %p5539_p9 }
0x1011   : > { %p5537_p4 = pneg %p5536_p1 }
0x1013   : > { %p5542_p13 = pnand %p5541_p10, %p5537_p4 }
0x1015   : > { %5545 = shalt.err (!%p5542_p13)
}
0x1016   : > { %4817 = dma.vmem_to_hbm [thread:$0]  (%p6636_p0), %s4079_s26, 128, %s4076_s29, %s4064_s3  }
0x1017 PF: > { %s4090_s4 = sand.u32 1, %s5612_s15   ;;  %p6637_p6 = scmp.ne.s32.totalorder %s6616_s2, 0 }
0x1018   : > { %p6638_p5 = scmp.ge.s32.totalorder %s5632_s23, 2  ;;  %s4091_s7 = scalar_lea.sflag [#allocation4], %s4090_s4 }
0x101a   : > { %p4873_p8 = pnand %p6638_p5, %p6637_p6 }
0x101c   : > { %p4874_p3 = pneg %p4873_p8 }
0x101e   : > { %5607 = dma.done.wait (%p4874_p3), %s4091_s7, 128  }
0x101f   : > { %5609 = vsyncadd (%p4874_p3), %s4091_s7, 4294967168  ;;  %s85_s23 = sadd.s32 1, %s5632_s23   ;;  %s6639_s15 = smov %s5616_s16 }
0x1020   : > { %p82_p2 = scmp.ge.s32.totalorder %s85_s23, 4   ;;  %s6640_s16 = smov %s5620_s18 }
0x1021   : > { %s6641_s18 = smov %s6045_s17  ;;  %s6642_s0 = smov %s5628_s22 }
0x1022   : > { %s6643_s22 = smov %s6645_s5  ;;  %84 = sbr.rel (!%p82_p2) target bundleno = 73 (0x49), region = 288 }
0x1027   :  { %4096 = vsyncpa [#allocation3], 1 }
0x1028   :  { %4098 = vsyncpa [#allocation3 + $0x1], 1 }
0x1029   :  { %4099 = vsyncpa [#allocation6], 1 }
0x102a   :  { %4100 = vsyncpa [#allocation9], 1 }
0x102b   :  { %4101 = vsyncpa [#allocation12], 1 }
0x102c   :  { %4102 = vsyncpa [#allocation15], 1 }
0x102d   :  { %4103 = vsyncpa [#allocation18], 1 }
0x102e   :  { %4104 = vsyncpa [#allocation21], 1 }
0x102f   :  { %4105 = vsyncpa [#allocation24], 1 }
0x1030   :  { %4106 = vsyncpa [#allocation27], 1 }
0x1031   :  { %4107 = vsyncpa [#allocation4], 1 }
0x1032   :  { %4109 = vsyncpa [#allocation4 + $0x1], 1 }

</bundles_post_ra>
